<compile_context>
chip_gen: v7x
topology: tpu7x:2x2x1
jax: 0.10.0
libtpu: 0.0.40
codegen_flags: <defaults>
</compile_context>

<pallas_src>
from functools import partial

import jax
import jax.numpy as jnp
from jax.experimental import pallas as pl
from jax.experimental.pallas import tpu as pltpu


def _round_up(n, m):
    return ((n + m - 1) // m) * m


def _mlp_kernel(x_ref, w1_ref, b1_ref, w2_ref, b2_ref, w3_ref, b3_ref, o_ref,
                *, dot_dtype):
    x_t = x_ref[...]                          # [5, TM]  (features x batch tile)
    w1 = w1_ref[...]                          # [200, 5]

    # ---- Layer 1: 5 -> 200 on the VPU (a K=5 MXU dot is ~96% zero padding).
    acc = w1[:, 0:1] * x_t[0:1, :]            # rank-1 outer-product FMA, [200, TM]
    for k in range(1, x_t.shape[0]):          # static unroll over the 5 features
        acc = acc + w1[:, k:k + 1] * x_t[k:k + 1, :]
    h1 = jnp.maximum(acc + b1_ref[...], 0.0)  # [200, TM]

    # ---- Layer 2: 200 -> 70 on the MXU (the one real matmul). bf16 optional.
    h2 = jnp.dot(w2_ref[...].astype(dot_dtype), h1.astype(dot_dtype),
                 preferred_element_type=jnp.float32)          # [70, TM]
    h2 = jnp.maximum(h2 + b2_ref[...], 0.0)

    # ---- Layer 3: 70 -> 1 on VPU + XLU (N=1 MXU output wastes the result path).
    y = jnp.sum(h2 * w3_ref[...], axis=0, keepdims=True) + b3_ref[...]  # [1, TM]
    o_ref[...] = jnp.maximum(y, 0.0)          # lane-dense store (TM multiple of 128)


def shelter_outcome_forward(x, params, *, tm=1024, dot_dtype=jnp.float32):
    """x: [B, 5] float32 (PyTorch convention). Returns [B, 1] float32.

    params hold PyTorch-layout weights: w_i [out, in], b_i [out].
    `tm` is the batch tile (lane) width — sweep 512..4096 on big batches;
    it is clamped so tiny batches don't over-pad.
    """
    B, F = x.shape
    w1, b1 = params["w1"], params["b1"]   # [200, 5], [200]
    w2, b2 = params["w2"], params["b2"]   # [70, 200], [70]
    w3, b3 = params["w3"], params["b3"]   # [1, 70],  [1]

    # Lane-tile over the batch; keep TM a multiple of 128 and don't over-pad.
    tm = max(128, min(tm, _round_up(B, 128)))
    b_pad = _round_up(B, tm)

    # Feature-major input slab [5, B_pad] (layout plumbing stays in the wrapper).
    x_t = jnp.pad(x.astype(jnp.float32), ((0, b_pad - B), (0, 0))).T

    # Column-vector biases / layer-3 weight so in-kernel broadcasts are trivial.
    b1c = b1.reshape(w1.shape[0], 1)      # [200, 1]
    b2c = b2.reshape(w2.shape[0], 1)      # [70, 1]
    w3c = w3.reshape(w2.shape[0], 1)      # [70, 1]
    b3c = b3.reshape(1, 1)                # [1, 1]

    const = lambda i: (0, 0)              # weights/biases resident across steps

    out = pl.pallas_call(
        partial(_mlp_kernel, dot_dtype=dot_dtype),
        out_shape=jax.ShapeDtypeStruct((1, b_pad), jnp.float32),
        grid=(b_pad // tm,),
        in_specs=[
            pl.BlockSpec((F, tm), lambda i: (0, i)),        # x tile, lane-dense
            pl.BlockSpec(w1.shape, const),                  # [200, 5]
            pl.BlockSpec((w1.shape[0], 1), const),          # [200, 1]
            pl.BlockSpec(w2.shape, const),                  # [70, 200]
            pl.BlockSpec((w2.shape[0], 1), const),          # [70, 1]
            pl.BlockSpec((w2.shape[0], 1), const),          # [70, 1]
            pl.BlockSpec((1, 1), const),                    # [1, 1]
        ],
        out_specs=pl.BlockSpec((1, tm), lambda i: (0, i)),  # lane-dense output
        compiler_params=pltpu.CompilerParams(
            dimension_semantics=("parallel",),              # shards over 2 TCs on v7x
        ),
    )(x_t, w1, b1c, w2, b2c, w3c, b3c)

    return out[0, :B].reshape(B, 1)


def init_params(key):
    """PyTorch nn.Linear-style init: U(-1/sqrt(fan_in), 1/sqrt(fan_in)),
    weights stored [out, in], biases [out]."""
    dims = [(5, 200), (200, 70), (70, 1)]
    params = {}
    keys = jax.random.split(key, 2 * len(dims))
    for i, (fan_in, fan_out) in enumerate(dims):
        bound = 1.0 / (fan_in ** 0.5)
        params[f"w{i + 1}"] = jax.random.uniform(
            keys[2 * i], (fan_out, fan_in), jnp.float32, -bound, bound)
        params[f"b{i + 1}"] = jax.random.uniform(
            keys[2 * i + 1], (fan_out,), jnp.float32, -bound, bound)
    return params


def reference_forward(x, params):
    h = x
    for i in (1, 2, 3):
        h = jnp.maximum(h @ params[f"w{i}"].T + params[f"b{i}"], 0.0)
    return h


if __name__ == "__main__":
    key = jax.random.PRNGKey(0)
    pkey, xkey = jax.random.split(key)
    params = init_params(pkey)

    # Small single-tile test (B=8 -> one 128-wide tile).
    B = 8
    x = jax.random.normal(xkey, (B, 5), dtype=jnp.float32)
    out = jax.block_until_ready(shelter_outcome_forward(x, params))
    ref = reference_forward(x, params)
    assert out.shape == (B, 1)
    assert jnp.allclose(out, ref, atol=1e-4, rtol=1e-4)

    # Multi-tile test: exercises the batch grid (3 steps) and batch padding.
    B2 = 300
    x2 = jax.random.normal(jax.random.fold_in(xkey, 1), (B2, 5), dtype=jnp.float32)
    out2 = jax.block_until_ready(shelter_outcome_forward(x2, params, tm=128))
    ref2 = reference_forward(x2, params)
    assert out2.shape == (B2, 1)
    assert jnp.allclose(out2, ref2, atol=1e-4, rtol=1e-4)

    # bf16 MXU fast path for layer 2 (v6e/v7x), f32 accumulation + f32 elementwise.
    out_bf16 = jax.block_until_ready(
        shelter_outcome_forward(x2, params, tm=128, dot_dtype=jnp.bfloat16))
    assert jnp.allclose(out_bf16, ref2, atol=5e-2, rtol=5e-2)

    print("KERNEL_OK")
</pallas_src>

<mosaic_0001>
module attributes {stable_mosaic.version = 11 : i64} {
  func.func @_mlp_kernel(%arg0: i32, %arg1: memref<5x128xf32, #tpu.memory_space<vmem>>, %arg2: memref<200x5xf32, #tpu.memory_space<vmem>>, %arg3: memref<200x1xf32, #tpu.memory_space<vmem>>, %arg4: memref<70x200xf32, #tpu.memory_space<vmem>>, %arg5: memref<70x1xf32, #tpu.memory_space<vmem>>, %arg6: memref<70x1xf32, #tpu.memory_space<vmem>>, %arg7: memref<1x1xf32, #tpu.memory_space<vmem>>, %arg8: memref<1x128xf32, #tpu.memory_space<vmem>>) attributes {dimension_semantics = [#tpu.dimension_semantics<parallel>], iteration_bounds = array<i64: 1>, scalar_prefetch = 0 : i64, scratch_operands = 0 : i64, tpu.core_type = #tpu.core_type<tc>, window_params = [{transform_indices = @transform_0, window_bounds = array<i64: 5, 128>}, {pipeline_mode = #tpu.pipeline_mode<synchronous>, transform_indices = @transform_1, window_bounds = array<i64: 200, 5>}, {pipeline_mode = #tpu.pipeline_mode<synchronous>, transform_indices = @transform_2, window_bounds = array<i64: 200, 1>}, {pipeline_mode = #tpu.pipeline_mode<synchronous>, transform_indices = @transform_3, window_bounds = array<i64: 70, 200>}, {pipeline_mode = #tpu.pipeline_mode<synchronous>, transform_indices = @transform_4, window_bounds = array<i64: 70, 1>}, {pipeline_mode = #tpu.pipeline_mode<synchronous>, transform_indices = @transform_5, window_bounds = array<i64: 70, 1>}, {pipeline_mode = #tpu.pipeline_mode<synchronous>, transform_indices = @transform_6, window_bounds = array<i64: 1, 1>}, {transform_indices = @transform_7, window_bounds = array<i64: 1, 128>}]} {
    %c0 = arith.constant 0 : index
    %c0_0 = arith.constant 0 : index
    %0 = vector.load %arg1[%c0, %c0_0] : memref<5x128xf32, #tpu.memory_space<vmem>>, vector<5x128xf32>
    %c0_1 = arith.constant 0 : index
    %c0_2 = arith.constant 0 : index
    %1 = vector.load %arg2[%c0_1, %c0_2] : memref<200x5xf32, #tpu.memory_space<vmem>>, vector<200x5xf32>
    %2 = vector.extract_strided_slice %1 {offsets = [0, 0], sizes = [200, 1], strides = [1, 1]} : vector<200x5xf32> to vector<200x1xf32>
    %3 = vector.extract_strided_slice %0 {offsets = [0, 0], sizes = [1, 128], strides = [1, 1]} : vector<5x128xf32> to vector<1x128xf32>
    %4 = vector.broadcast %2 : vector<200x1xf32> to vector<200x128xf32>
    %5 = vector.broadcast %3 : vector<1x128xf32> to vector<200x128xf32>
    %6 = arith.mulf %4, %5 : vector<200x128xf32>
    %7 = vector.extract_strided_slice %1 {offsets = [0, 1], sizes = [200, 1], strides = [1, 1]} : vector<200x5xf32> to vector<200x1xf32>
    %8 = vector.extract_strided_slice %0 {offsets = [1, 0], sizes = [1, 128], strides = [1, 1]} : vector<5x128xf32> to vector<1x128xf32>
    %9 = vector.broadcast %7 : vector<200x1xf32> to vector<200x128xf32>
    %10 = vector.broadcast %8 : vector<1x128xf32> to vector<200x128xf32>
    %11 = arith.mulf %9, %10 : vector<200x128xf32>
    %12 = arith.addf %6, %11 : vector<200x128xf32>
    %13 = vector.extract_strided_slice %1 {offsets = [0, 2], sizes = [200, 1], strides = [1, 1]} : vector<200x5xf32> to vector<200x1xf32>
    %14 = vector.extract_strided_slice %0 {offsets = [2, 0], sizes = [1, 128], strides = [1, 1]} : vector<5x128xf32> to vector<1x128xf32>
    %15 = vector.broadcast %13 : vector<200x1xf32> to vector<200x128xf32>
    %16 = vector.broadcast %14 : vector<1x128xf32> to vector<200x128xf32>
    %17 = arith.mulf %15, %16 : vector<200x128xf32>
    %18 = arith.addf %12, %17 : vector<200x128xf32>
    %19 = vector.extract_strided_slice %1 {offsets = [0, 3], sizes = [200, 1], strides = [1, 1]} : vector<200x5xf32> to vector<200x1xf32>
    %20 = vector.extract_strided_slice %0 {offsets = [3, 0], sizes = [1, 128], strides = [1, 1]} : vector<5x128xf32> to vector<1x128xf32>
    %21 = vector.broadcast %19 : vector<200x1xf32> to vector<200x128xf32>
    %22 = vector.broadcast %20 : vector<1x128xf32> to vector<200x128xf32>
    %23 = arith.mulf %21, %22 : vector<200x128xf32>
    %24 = arith.addf %18, %23 : vector<200x128xf32>
    %25 = vector.extract_strided_slice %1 {offsets = [0, 4], sizes = [200, 1], strides = [1, 1]} : vector<200x5xf32> to vector<200x1xf32>
    %26 = vector.extract_strided_slice %0 {offsets = [4, 0], sizes = [1, 128], strides = [1, 1]} : vector<5x128xf32> to vector<1x128xf32>
    %27 = vector.broadcast %25 : vector<200x1xf32> to vector<200x128xf32>
    %28 = vector.broadcast %26 : vector<1x128xf32> to vector<200x128xf32>
    %29 = arith.mulf %27, %28 : vector<200x128xf32>
    %30 = arith.addf %24, %29 : vector<200x128xf32>
    %c0_3 = arith.constant 0 : index
    %c0_4 = arith.constant 0 : index
    %31 = vector.load %arg3[%c0_3, %c0_4] : memref<200x1xf32, #tpu.memory_space<vmem>>, vector<200x1xf32>
    %32 = vector.broadcast %31 : vector<200x1xf32> to vector<200x128xf32>
    %33 = arith.addf %30, %32 : vector<200x128xf32>
    %cst = arith.constant 0.000000e+00 : f32
    %34 = vector.broadcast %cst : f32 to vector<200x128xf32>
    %35 = arith.maximumf %33, %34 : vector<200x128xf32>
    %c0_5 = arith.constant 0 : index
    %c0_6 = arith.constant 0 : index
    %36 = vector.load %arg4[%c0_5, %c0_6] : memref<70x200xf32, #tpu.memory_space<vmem>>, vector<70x200xf32>
    %cst_7 = arith.constant dense<0.000000e+00> : vector<70x128xf32>
    %37 = tpu.matmul %36, %35, %cst_7 {dimension_numbers = #tpu.dot_dimension_numbers<[1], [0], [0], [1], [0, 0, 1, 1], [], []>} : vector<70x200xf32>, vector<200x128xf32>, vector<70x128xf32> -> vector<70x128xf32>
    %c0_8 = arith.constant 0 : index
    %c0_9 = arith.constant 0 : index
    %38 = vector.load %arg5[%c0_8, %c0_9] : memref<70x1xf32, #tpu.memory_space<vmem>>, vector<70x1xf32>
    %39 = vector.broadcast %38 : vector<70x1xf32> to vector<70x128xf32>
    %40 = arith.addf %37, %39 : vector<70x128xf32>
    %cst_10 = arith.constant 0.000000e+00 : f32
    %41 = vector.broadcast %cst_10 : f32 to vector<70x128xf32>
    %42 = arith.maximumf %40, %41 : vector<70x128xf32>
    %c0_11 = arith.constant 0 : index
    %c0_12 = arith.constant 0 : index
    %43 = vector.load %arg6[%c0_11, %c0_12] : memref<70x1xf32, #tpu.memory_space<vmem>>, vector<70x1xf32>
    %44 = vector.broadcast %43 : vector<70x1xf32> to vector<70x128xf32>
    %45 = arith.mulf %42, %44 : vector<70x128xf32>
    %cst_13 = arith.constant dense<0.000000e+00> : vector<128xf32>
    %46 = vector.multi_reduction <add>, %45, %cst_13 [0] : vector<70x128xf32> to vector<128xf32>
    %47 = vector.shape_cast %46 : vector<128xf32> to vector<1x128xf32>
    %c0_14 = arith.constant 0 : index
    %c0_15 = arith.constant 0 : index
    %48 = vector.load %arg7[%c0_14, %c0_15] : memref<1x1xf32, #tpu.memory_space<vmem>>, vector<1x1xf32>
    %49 = vector.broadcast %48 : vector<1x1xf32> to vector<1x128xf32>
    %50 = arith.addf %47, %49 : vector<1x128xf32>
    %cst_16 = arith.constant 0.000000e+00 : f32
    %51 = vector.broadcast %cst_16 : f32 to vector<1x128xf32>
    %52 = arith.maximumf %50, %51 : vector<1x128xf32>
    %c0_17 = arith.constant 0 : index
    %c0_18 = arith.constant 0 : index
    %53 = vector.load %arg8[%c0_17, %c0_18] : memref<1x128xf32, #tpu.memory_space<vmem>>, vector<1x128xf32>
    tpu.vector_store %arg8[%c0_17, %c0_18], %52 {strides = array<i32>} : memref<1x128xf32, #tpu.memory_space<vmem>>, vector<1x128xf32>,
    return
  }
  func.func @transform_0(%arg0: i32) -> (i32, i32) {
    %c0_i32 = arith.constant 0 : i32
    %c0_i32_0 = arith.constant 0 : i32
    return %c0_i32, %arg0 : i32, i32
  }
  func.func @transform_1(%arg0: i32) -> (i32, i32) {
    %c0_i32 = arith.constant 0 : i32
    %c0_i32_0 = arith.constant 0 : i32
    %c0_i32_1 = arith.constant 0 : i32
    return %c0_i32, %c0_i32_0 : i32, i32
  }
  func.func @transform_2(%arg0: i32) -> (i32, i32) {
    %c0_i32 = arith.constant 0 : i32
    %c0_i32_0 = arith.constant 0 : i32
    %c0_i32_1 = arith.constant 0 : i32
    return %c0_i32, %c0_i32_0 : i32, i32
  }
  func.func @transform_3(%arg0: i32) -> (i32, i32) {
    %c0_i32 = arith.constant 0 : i32
    %c0_i32_0 = arith.constant 0 : i32
    %c0_i32_1 = arith.constant 0 : i32
    return %c0_i32, %c0_i32_0 : i32, i32
  }
  func.func @transform_4(%arg0: i32) -> (i32, i32) {
    %c0_i32 = arith.constant 0 : i32
    %c0_i32_0 = arith.constant 0 : i32
    %c0_i32_1 = arith.constant 0 : i32
    return %c0_i32, %c0_i32_0 : i32, i32
  }
  func.func @transform_5(%arg0: i32) -> (i32, i32) {
    %c0_i32 = arith.constant 0 : i32
    %c0_i32_0 = arith.constant 0 : i32
    %c0_i32_1 = arith.constant 0 : i32
    return %c0_i32, %c0_i32_0 : i32, i32
  }
  func.func @transform_6(%arg0: i32) -> (i32, i32) {
    %c0_i32 = arith.constant 0 : i32
    %c0_i32_0 = arith.constant 0 : i32
    %c0_i32_1 = arith.constant 0 : i32
    return %c0_i32, %c0_i32_0 : i32, i32
  }
  func.func @transform_7(%arg0: i32) -> (i32, i32) {
    %c0_i32 = arith.constant 0 : i32
    %c0_i32_0 = arith.constant 0 : i32
    return %c0_i32, %arg0 : i32, i32
  }
}

</mosaic_0001>

<bundles_post_ra>
// kernel: tpu_custom_call.1
= control target key start
LH: loop header
LB: loop body
LE: loop exit
PB: predicated region body
PF: predicated region fallthrough
CT: control target
= control target key end

     0   :  { %s2514_s0 = inlined_call_operand.vmem [shape: f32[5,128], index: 0, kind: input, shape index: {}]   ;;  %s2515_s1 = inlined_call_operand.vmem [shape: f32[200,5], index: 1, kind: input, shape index: {}]   ;;  %s2516_s2 = inlined_call_operand.vmem [shape: f32[200,1], index: 2, kind: input, shape index: {}]   ;;  %s2517_s3 = inlined_call_operand.vmem [shape: f32[70,200], index: 3, kind: input, shape index: {}]   ;;  %s2518_s4 = inlined_call_operand.vmem [shape: f32[70,1], index: 4, kind: input, shape index: {}]   ;;  %s2519_s5 = inlined_call_operand.vmem [shape: f32[70,1], index: 5, kind: input, shape index: {}]   ;;  %s2520_s6 = inlined_call_operand.<no memory space> [shape: f32[1,1], index: 6, kind: input, shape index: {}]   ;;  %s2521_s7 = inlined_call_operand.hbm [shape: f32[1,128], index: 7, kind: output, shape index: {}]  }
   0x1   :  { %v12_v0 = vstv %s2520_s6 }
   0x2   :  { %13 = vst [vmem:[#allocation2] sm:$0x1] %v12_v0 }
   0x3   :  { %v1555_v1 = vld [vmem:[%s2515_s1 + $0x10] sm:$0xff]  ;;  %v1560_v2 = vld [vmem:[%s2515_s1 + $0x8] sm:$0xff]  ;;  %v1501_v3 = vmov 1   ;;  %v2525_v4 = vmov 0   ;;  %v1568_v5 = vld [vmem:[%s2515_s1 + $0x18] sm:$0xff] }
   0x4   :  { %1431 = vset.pattern.permute.xlu0 %v1501_v3  ;;  %1429 = vset.pattern.permute.xlu1 %v2525_v4  ;;  %v1573_v6 = vld [vmem:[%s2515_s1 + $0x20] sm:$0xff]  ;;  %v1580_v7 = vld [vmem:[%s2515_s1 + $0x28] sm:$0xff]  ;;  %v1585_v8 = vld [vmem:[%s2515_s1 + $0x30] sm:$0xff] }
   0x5   :  { %67 = vperm.xlu1 %1429, %v1555_v1   ;;  %214 = vperm.xlu0 %1431, %v1560_v2  }
   0x9   :  { %72 = vperm.xlu1 %1429, %v1568_v5   ;;  %226 = vperm.xlu0 %1431, %v1573_v6  }
   0xa   :  { %14 = vsyncpa [#allocation4], 0  ;;  %v1592_v9 = vld [vmem:[%s2515_s1 + $0x38] sm:$0xff]  ;;  %v1597_v10 = vld [vmem:[%s2515_s1 + $0x40] sm:$0xff]  ;;  %v2523_v28 = vmov 3   ;;  %v2529_v29 = vmov 4  }
   0xb   :  { %v1604_v11 = vld [vmem:[%s2515_s1 + $0x48] sm:$0xff]  ;;  %v1609_v12 = vld [vmem:[%s2515_s1 + $0x50] sm:$0xff]  ;;  %v1616_v13 = vld [vmem:[%s2515_s1 + $0x58] sm:$0xff]  ;;  %v2522_v30 = vmov 2   ;;  %vm1097_vm0 = vcmask 588800   ;;  %vm1314_vm1 = vcmask 1045504  }
   0xc   :  { %v1621_v14 = vld [vmem:[%s2515_s1 + $0x60] sm:$0xff]  ;;  %v1628_v15 = vld [vmem:[%s2515_s1 + $0x68] sm:$0xff]  ;;  %v1633_v16 = vld [vmem:[%s2515_s1 + $0x70] sm:$0xff] }
   0xd   :  { %82 = vperm.xlu1 %1429, %v1580_v7   ;;  %234 = vperm.xlu0 %1431, %v1585_v8   ;;  %v1640_v17 = vld [vmem:[%s2515_s1 + $0x78] sm:$0xff]  ;;  %v1645_v18 = vld [vmem:[%s2515_s1 + $0x80] sm:$0xff]  ;;  %v1652_v19 = vld [vmem:[%s2515_s1 + $0x88] sm:$0xff] }
   0xe   :  { %v1657_v20 = vld [vmem:[%s2515_s1 + $0x90] sm:$0xff]  ;;  %v1664_v21 = vld [vmem:[%s2515_s1 + $0x98] sm:$0xff]  ;;  %v1669_v22 = vld [vmem:[%s2515_s1 + $0xa0] sm:$0xff] }
   0xf   :  { %2540 = vst [vmem:[#allocation6_spill] sm:$0xff] %v1669_v22  ;;  %v1676_v23 = vld [vmem:[%s2515_s1 + $0xa8] sm:$0xff]  ;;  %v1681_v24 = vld [vmem:[%s2515_s1 + $0xb0] sm:$0xff]  ;;  %v1688_v25 = vld [vmem:[%s2515_s1 + $0xb8] sm:$0xff] }
  0x10   :  { %2541 = vst [vmem:[#allocation7_spill] sm:$0xff] %v1676_v23  ;;  %2542 = vst [vmem:[#allocation8_spill] sm:$0xff] %v1681_v24  ;;  %v1693_v26 = vld [vmem:[%s2515_s1 + $0xc0] sm:$0xff]  ;;  %v827_v0 = vld [vmem:[%s2516_s2 + $0x10] sm:$0xff] }
  0x11   :  { %92 = vperm.xlu1 %1429, %v1592_v9   ;;  %242 = vperm.xlu0 %1431, %v1597_v10   ;;  %2543 = vst [vmem:[#allocation9_spill] sm:$0xff] %v1688_v25  ;;  %2544 = vst [vmem:[#allocation10_spill] sm:$0xff] %v1693_v26  ;;  %v1700_v27 = vld [vmem:[%s2515_s1] sm:$0xff] }
  0x12   :  { %v825_v55 = vld [vmem:[%s2516_s2] sm:$0xff] }
  0x15   :  { %102 = vperm.xlu1 %1429, %v1604_v11   ;;  %250 = vperm.xlu0 %1431, %v1609_v12  }
  0x19   :  { %112 = vperm.xlu1 %1429, %v1616_v13   ;;  %258 = vperm.xlu0 %1431, %v1621_v14  }
  0x1d   :  { %122 = vperm.xlu1 %1429, %v1628_v15   ;;  %266 = vperm.xlu0 %1431, %v1633_v16  }
  0x21   :  { %132 = vperm.xlu1 %1429, %v1640_v17   ;;  %274 = vperm.xlu0 %1431, %v1645_v18  }
  0x25   :  { %142 = vperm.xlu1 %1429, %v1652_v19   ;;  %282 = vperm.xlu0 %1431, %v1657_v20  }
  0x29   :  { %152 = vperm.xlu1 %1429, %v1664_v21   ;;  %290 = vperm.xlu0 %1431, %v1669_v22  }
  0x2d   :  { %162 = vperm.xlu1 %1429, %v1676_v23   ;;  %298 = vperm.xlu0 %1431, %v1681_v24  }
  0x31   :  { %172 = vperm.xlu1 %1429, %v1688_v25   ;;  %306 = vperm.xlu0 %1431, %v1693_v26  }
  0x35   :  { %1430 = vset.pattern.permute.xlu1 %v1501_v3  ;;  %1434 = vset.pattern.permute.xlu0 %v2523_v28  ;;  %v826_v3 = vld [vmem:[%s2516_s2 + $0x8] sm:$0xff] }
  0x36   :  { %522 = vperm.xlu0 %1434, %v1560_v2   ;;  %210 = vperm.xlu1 %1430, %v1700_v27  }
  0x3a   :  { %526 = vperm.xlu0 %1434, %v1555_v1   ;;  %218 = vperm.xlu1 %1430, %v1555_v1  }
  0x3e   :  { %1437 = vset.pattern.permute.xlu0 %v2529_v29  ;;  %222 = vperm.xlu1 %1430, %v1568_v5  }
  0x3f   :  { %680 = vperm.xlu0 %1437, %v1555_v1  }
  0x42   :  { %230 = vperm.xlu1 %1430, %v1580_v7  }
  0x43   :  { %688 = vperm.xlu0 %1437, %v1573_v6  }
  0x46   :  { %238 = vperm.xlu1 %1430, %v1592_v9  }
  0x47   :  { %696 = vperm.xlu0 %1437, %v1585_v8  }
  0x4a   :  { %246 = vperm.xlu1 %1430, %v1604_v11  }
  0x4b   :  { %704 = vperm.xlu0 %1437, %v1597_v10  }
  0x4e   :  { %254 = vperm.xlu1 %1430, %v1616_v13  }
  0x4f   :  { %712 = vperm.xlu0 %1437, %v1609_v12  }
  0x52   :  { %262 = vperm.xlu1 %1430, %v1628_v15  }
  0x53   :  { %720 = vperm.xlu0 %1437, %v1621_v14  }
  0x56   :  { %270 = vperm.xlu1 %1430, %v1640_v17  }
  0x57   :  { %728 = vperm.xlu0 %1437, %v1633_v16  }
  0x5a   :  { %278 = vperm.xlu1 %1430, %v1652_v19  }
  0x5b   :  { %736 = vperm.xlu0 %1437, %v1645_v18  }
  0x5e   :  { %286 = vperm.xlu1 %1430, %v1664_v21  }
  0x5f   :  { %744 = vperm.xlu0 %1437, %v1657_v20  }
  0x62   :  { %294 = vperm.xlu1 %1430, %v1676_v23  }
  0x63   :  { %1462 = vset.pattern.permute.xlu0 %v2522_v30 }
  0x64   :  { %368 = vperm.xlu0 %1462, %v1560_v2  }
  0x66   :  { %302 = vperm.xlu1 %1430, %v1688_v25  }
  0x68   :  { %380 = vperm.xlu0 %1462, %v1573_v6  }
  0x6a   :  { %1432 = vset.pattern.permute.xlu1 %v2522_v30 }
  0x6b   :  { %364 = vperm.xlu1 %1432, %v1700_v27  }
  0x6c   :  { %388 = vperm.xlu0 %1462, %v1585_v8  }
  0x6f   :  { %372 = vperm.xlu1 %1432, %v1555_v1  }
  0x70   :  { %396 = vperm.xlu0 %1462, %v1597_v10  }
  0x73   :  { %376 = vperm.xlu1 %1432, %v1568_v5  }
  0x74   :  { %404 = vperm.xlu0 %1462, %v1609_v12  }
  0x77   :  { %384 = vperm.xlu1 %1432, %v1580_v7  }
  0x78   :  { %412 = vperm.xlu0 %1462, %v1621_v14  }
  0x7b   :  { %392 = vperm.xlu1 %1432, %v1592_v9  }
  0x7c   :  { %420 = vperm.xlu0 %1462, %v1633_v16  }
  0x7f   :  { %400 = vperm.xlu1 %1432, %v1604_v11  }
  0x80   :  { %428 = vperm.xlu0 %1462, %v1645_v18  }
  0x83   :  { %408 = vperm.xlu1 %1432, %v1616_v13  }
  0x84   :  { %v1745_v31 = vpop.permute.xlu1 %67  ;;  %436 = vperm.xlu0 %1462, %v1657_v20   ;;  %v1748_v32 = vpop.permute.xlu0 %214 }
  0x87   :  { %416 = vperm.xlu1 %1432, %v1628_v15  }
  0x88   :  { %v1751_v33 = vpop.permute.xlu1 %72  ;;  %444 = vperm.xlu0 %1462, %v1669_v22   ;;  %v1754_v34 = vpop.permute.xlu0 %226 }
  0x8b   :  { %424 = vperm.xlu1 %1432, %v1640_v17  }
  0x8c   :  { %v1757_v35 = vpop.permute.xlu1 %82  ;;  %452 = vperm.xlu0 %1462, %v1681_v24   ;;  %v1760_v36 = vpop.permute.xlu0 %234 }
  0x8f   :  { %432 = vperm.xlu1 %1432, %v1652_v19  }
  0x90   :  { %v1763_v37 = vpop.permute.xlu1 %92  ;;  %456 = vperm.xlu0 %1462, %v1688_v25   ;;  %v1766_v38 = vpop.permute.xlu0 %242 }
  0x91   :  { %2545 = vst [vmem:[#allocation11_spill] sm:$0xff] %v1763_v37 }
  0x93   :  { %440 = vperm.xlu1 %1432, %v1664_v21  }
  0x94   :  { %v1769_v39 = vpop.permute.xlu1 %102  ;;  %1466 = vset.pattern.permute.xlu0 %v2525_v4  ;;  %v1772_v40 = vpop.permute.xlu0 %250 }
  0x95   :  { %2546 = vst [vmem:[#allocation12_spill] sm:$0xff] %v1769_v39  ;;  %57 = vperm.xlu0 %1466, %v1700_v27  }
  0x97   :  { %448 = vperm.xlu1 %1432, %v1676_v23  }
  0x98   :  { %v1776_v41 = vpop.permute.xlu1 %112  ;;  %v1778_v42 = vpop.permute.xlu0 %258 }
  0x99   :  { %2547 = vst [vmem:[#allocation13_spill] sm:$0xff] %v1776_v41  ;;  %62 = vperm.xlu0 %1466, %v1560_v2  }
  0x9b   :  { %1433 = vset.pattern.permute.xlu1 %v2523_v28 }
  0x9c   :  { %v1782_v43 = vpop.permute.xlu1 %122  ;;  %518 = vperm.xlu1 %1433, %v1700_v27   ;;  %v1785_v44 = vpop.permute.xlu0 %266 }
  0x9d   :  { %2548 = vst [vmem:[#allocation14_spill] sm:$0xff] %v1782_v43  ;;  %77 = vperm.xlu0 %1466, %v1573_v6  }
  0xa0   :  { %v1788_v45 = vpop.permute.xlu1 %132  ;;  %1435 = vset.pattern.permute.xlu1 %v2529_v29  ;;  %v1791_v46 = vpop.permute.xlu0 %274 }
  0xa1   :  { %2549 = vst [vmem:[#allocation15_spill] sm:$0xff] %v1788_v45  ;;  %87 = vperm.xlu0 %1466, %v1585_v8   ;;  %672 = vperm.xlu1 %1435, %v1700_v27  }
  0xa4   :  { %v1795_v47 = vpop.permute.xlu1 %142  ;;  %v1797_v48 = vpop.permute.xlu0 %282 }
  0xa5   :  { %2550 = vst [vmem:[#allocation16_spill] sm:$0xff] %v1795_v47  ;;  %97 = vperm.xlu0 %1466, %v1597_v10   ;;  %676 = vperm.xlu1 %1435, %v1560_v2  }
  0xa8   :  { %v1801_v49 = vpop.permute.xlu1 %152  ;;  %v1803_v50 = vpop.permute.xlu0 %290 }
  0xa9   :  { %2551 = vst [vmem:[#allocation17_spill] sm:$0xff] %v1801_v49  ;;  %107 = vperm.xlu0 %1466, %v1609_v12   ;;  %1436 = vset.pattern.permute.xlu1 %v2523_v28 }
  0xaa   :  { %530 = vperm.xlu1 %1436, %v1568_v5  }
  0xac   :  { %v1808_v51 = vpop.permute.xlu1 %162  ;;  %v1810_v52 = vpop.permute.xlu0 %298 }
  0xad   :  { %2552 = vst [vmem:[#allocation18_spill] sm:$0xff] %v1808_v51  ;;  %117 = vperm.xlu0 %1466, %v1621_v14   ;;  %v2570_v51 = vmov 3  }
  0xae   :  { %1438 = vset.pattern.permute.xlu1 %v2529_v29 }
  0xaf   :  { %684 = vperm.xlu1 %1438, %v1568_v5  }
  0xb0   :  { %v1815_v53 = vpop.permute.xlu1 %172  ;;  %v1817_v54 = vpop.permute.xlu0 %306 }
  0xb1   :  { %2553 = vst [vmem:[#allocation19_spill] sm:$0xff] %v1815_v53  ;;  %2554 = vst [vmem:[#allocation20_spill] sm:$0xff] %v1817_v54  ;;  %127 = vperm.xlu0 %1466, %v1633_v16   ;;  %v2566_v54 = vmov 0  }
  0xb3   :  { %1439 = vset.pattern.permute.xlu1 %v2525_v4 }
  0xb4   :  { %852 = vperm.xlu1 %1439, %v825_v55  }
  0xb5   :  { %137 = vperm.xlu0 %1466, %v1645_v18   ;;  %v1825_v56 = vpop.permute.xlu1 %210  ;;  %v1827_v57 = vpop.permute.xlu0 %522 }
  0xb8   :  { %1440 = vset.pattern.permute.xlu1 %v2523_v28 }
  0xb9   :  { %147 = vperm.xlu0 %1466, %v1657_v20   ;;  %534 = vperm.xlu1 %1440, %v1573_v6   ;;  %v1832_v58 = vpop.permute.xlu1 %218  ;;  %v1834_v59 = vpop.permute.xlu0 %526 }
  0xbd   :  { %157 = vperm.xlu0 %1466, %v1669_v22   ;;  %538 = vperm.xlu1 %1440, %v1580_v7   ;;  %v1838_v60 = vpop.permute.xlu1 %222 }
  0xbe   :  { %v1840_v61 = vpop.permute.xlu0 %680 }
  0xc1   :  { %167 = vperm.xlu0 %1466, %v1681_v24   ;;  %1441 = vset.pattern.permute.xlu1 %v2529_v29  ;;  %v1844_v62 = vpop.permute.xlu1 %230 }
  0xc2   :  { %692 = vperm.xlu1 %1441, %v1580_v7   ;;  %v1847_v63 = vpop.permute.xlu0 %688  ;;  %v828_v7 = vld [vmem:[%s2516_s2 + $0x18] sm:$0xff] }
  0xc3   :  { %2555 = vst [vmem:[#allocation21_spill] sm:$0xff] %v1847_v63 }
  0xc5   :  { %177 = vperm.xlu0 %1466, %v1693_v26   ;;  %v1853_v1 = vpop.permute.xlu1 %238 }
  0xc6   :  { %2556 = vst [vmem:[#allocation22_spill] sm:$0xff] %v1853_v1  ;;  %1442 = vset.pattern.permute.xlu1 %v2525_v4  ;;  %v1856_v2 = vpop.permute.xlu0 %696 }
  0xc7   :  { %2557 = vst [vmem:[#allocation23_spill] sm:$0xff] %v1856_v2  ;;  %862 = vperm.xlu1 %1442, %v827_v0   ;;  %v830_v0 = vld [vmem:[%s2516_s2 + $0x28] sm:$0xff] }
  0xc9   :  { %857 = vperm.xlu0 %1466, %v826_v3   ;;  %v1861_v5 = vpop.permute.xlu1 %246  ;;  %v2527_v3 = vmov 0.0|0.0  }
  0xca   :  { %2558 = vst [vmem:[#allocation24_spill] sm:$0xff] %v1861_v5  ;;  %v1863_v6 = vpop.permute.xlu0 %704  ;;  %1359 = vmatprep.subr.bf16.mxu0 %v2527_v3  ;;  %1395 = vmatprep.subr.bf16.mxu1 %v2527_v3  ;;  %v829_v3 = vld [vmem:[%s2516_s2 + $0x20] sm:$0xff] }
  0xcb   :  { %2559 = vst [vmem:[#allocation25_spill] sm:$0xff] %v1863_v6  ;;  %1443 = vset.pattern.permute.xlu1 %v2523_v28 }
  0xcc   :  { %542 = vperm.xlu1 %1443, %v1585_v8  }
  0xcd   :  { %867 = vperm.xlu0 %1466, %v828_v7   ;;  %v1870_v27 = vpop.permute.xlu1 %254  ;;  %v832_v7 = vld [vmem:[%s2516_s2 + $0x38] sm:$0xff] }
  0xce   :  { %2560 = vst [vmem:[#allocation26_spill] sm:$0xff] %v1870_v27  ;;  %v1872_v55 = vpop.permute.xlu0 %712 }
  0xcf   :  { %2561 = vst [vmem:[#allocation27_spill] sm:$0xff] %v1872_v55 }
  0xd0   :  { %546 = vperm.xlu1 %1443, %v1592_v9  }
  0xd1   :  { %877 = vperm.xlu0 %1466, %v830_v0   ;;  %v1880_v30 = vpop.permute.xlu1 %262  ;;  %v834_v0 = vld [vmem:[%s2516_s2 + $0x48] sm:$0xff] }
  0xd2   :  { %2562 = vst [vmem:[#allocation28_spill] sm:$0xff] %v1880_v30  ;;  %v1882_v8 = vpop.permute.xlu0 %720 }
  0xd3   :  { %2563 = vst [vmem:[#allocation29_spill] sm:$0xff] %v1882_v8 }
  0xd4   :  { %1444 = vset.pattern.permute.xlu1 %v2529_v29 }
  0xd5   :  { %887 = vperm.xlu0 %1466, %v832_v7   ;;  %700 = vperm.xlu1 %1444, %v1592_v9   ;;  %v1889_v28 = vpop.permute.xlu1 %270  ;;  %v836_v9 = vld [vmem:[%s2516_s2 + $0x58] sm:$0xff] }
  0xd6   :  { %2564 = vst [vmem:[#allocation30_spill] sm:$0xff] %v1889_v28  ;;  %v1891_v4 = vpop.permute.xlu0 %728  ;;  %v833_v28 = vld [vmem:[%s2516_s2 + $0x40] sm:$0xff] }
  0xd7   :  { %2565 = vst [vmem:[#allocation31_spill] sm:$0xff] %v1891_v4 }
  0xd9   :  { %897 = vperm.xlu0 %1466, %v834_v0   ;;  %1445 = vset.pattern.permute.xlu1 %v2566_v54  ;;  %v1900_v53 = vpop.permute.xlu1 %278  ;;  %v838_v0 = vld [vmem:[%s2516_s2 + $0x68] sm:$0xff] }
  0xda   :  { %2567 = vst [vmem:[#allocation32_spill] sm:$0xff] %v1900_v53  ;;  %872 = vperm.xlu1 %1445, %v829_v3   ;;  %v1902_v7 = vpop.permute.xlu0 %736 }
  0xdb   :  { %2568 = vst [vmem:[#allocation33_spill] sm:$0xff] %v1902_v7  ;;  %v840_v7 = vld [vmem:[%s2516_s2 + $0x78] sm:$0xff] }
  0xdd   :  { %907 = vperm.xlu0 %1466, %v836_v9   ;;  %v1907_v29 = vpop.permute.xlu1 %286 }
  0xde   :  { %2569 = vst [vmem:[#allocation34_spill] sm:$0xff] %v1907_v29  ;;  %1446 = vset.pattern.permute.xlu1 %v2570_v51  ;;  %v1910_v49 = vpop.permute.xlu0 %744 }
  0xdf   :  { %2571 = vst [vmem:[#allocation35_spill] sm:$0xff] %v1910_v49  ;;  %550 = vperm.xlu1 %1446, %v1597_v10   ;;  %v842_v49 = vld [vmem:[%s2516_s2 + $0x88] sm:$0xff]  ;;  %v2574_v10 = vmov 4  }
  0xe1   :  { %917 = vperm.xlu0 %1466, %v838_v0   ;;  %v1916_v3 = vpop.permute.xlu1 %294 }
  0xe2   :  { %2572 = vst [vmem:[#allocation36_spill] sm:$0xff] %v1916_v3  ;;  %v843_v3 = vld [vmem:[%s2516_s2 + $0x90] sm:$0xff] }
  0xe3   :  { %v1921_v9 = vpop.permute.xlu0 %368  ;;  %554 = vperm.xlu1 %1446, %v1604_v11  }
  0xe5   :  { %927 = vperm.xlu0 %1466, %v840_v7   ;;  %v1924_v29 = vpop.permute.xlu1 %302  ;;  %v831_v7 = vld [vmem:[%s2516_s2 + $0x30] sm:$0xff] }
  0xe6   :  { %2573 = vst [vmem:[#allocation37_spill] sm:$0xff] %v1924_v29 }
  0xe7   :  { %v1929_v47 = vpop.permute.xlu0 %380  ;;  %1447 = vset.pattern.permute.xlu1 %v2574_v10 }
  0xe8   :  { %708 = vperm.xlu1 %1447, %v1604_v11   ;;  %v845_v11 = vld [vmem:[%s2516_s2 + $0xa0] sm:$0xff] }
  0xe9   :  { %937 = vperm.xlu0 %1466, %v842_v49  }
  0xea   :  { %v1933_v0 = vpop.permute.xlu1 %364 }
  0xeb   :  { %v1941_v29 = vpop.permute.xlu0 %388 }
  0xec   :  { %1448 = vset.pattern.permute.xlu1 %v2566_v54 }
  0xed   :  { %942 = vperm.xlu0 %1466, %v843_v3   ;;  %882 = vperm.xlu1 %1448, %v831_v7  }
  0xee   :  { %v1944_v53 = vpop.permute.xlu1 %372 }
  0xef   :  { %v1949_v49 = vpop.permute.xlu0 %396 }
  0xf1   :  { %952 = vperm.xlu0 %1466, %v845_v11   ;;  %1449 = vset.pattern.permute.xlu1 %v2570_v51 }
  0xf2   :  { %558 = vperm.xlu1 %1449, %v1609_v12   ;;  %v1953_v4 = vpop.permute.xlu1 %376 }
  0xf3   :  { %v1955_v45 = vpop.permute.xlu0 %404 }
  0xf5   :  { %1471 = vset.pattern.permute.xlu0 %v2570_v51 }
  0xf6   :  { %610 = vperm.xlu0 %1471, %v1688_v25   ;;  %562 = vperm.xlu1 %1449, %v1616_v13   ;;  %v1960_v3 = vpop.permute.xlu1 %384 }
  0xf7   :  { %2575 = vst [vmem:[#allocation38_spill] sm:$0xff] %v1960_v3  ;;  %v1962_v7 = vpop.permute.xlu0 %412 }
  0xfa   :  { %1450 = vset.pattern.permute.xlu1 %v2574_v10  ;;  %v1965_v11 = vpop.permute.xlu1 %392  ;;  %614 = vperm.xlu0 %1471, %v1693_v26  }
  0xfb   :  { %2576 = vst [vmem:[#allocation39_spill] sm:$0xff] %v1965_v11  ;;  %v1968_v12 = vpop.permute.xlu0 %420  ;;  %716 = vperm.xlu1 %1450, %v1616_v13  }
  0xfe   :  { %v1974_v8 = vpop.permute.xlu1 %400  ;;  %1475 = vset.pattern.permute.xlu0 %v2574_v10 }
  0xff   :  { %2577 = vst [vmem:[#allocation40_spill] sm:$0xff] %v1974_v8  ;;  %v1977_v43 = vpop.permute.xlu0 %428  ;;  %1451 = vset.pattern.permute.xlu1 %v2566_v54  ;;  %768 = vperm.xlu0 %1475, %v1693_v26   ;;  %v180_v26 = vlaneseq }
 0x100   :  { %892 = vperm.xlu1 %1451, %v833_v28  }
 0x101   :  { %v2013_v39 = vshrl.u32 %v180_v26, 7 }
 0x102   :  { %v1981_v30 = vpop.permute.xlu1 %408 }
 0x103   :  { %2578 = vst [vmem:[#allocation41_spill] sm:$0xff] %v1981_v30  ;;  %v1983_v55 = vpop.permute.xlu0 %436  ;;  %1476 = vset.pattern.permute.xlu0 %v2566_v54 }
 0x104   :  { %1452 = vset.pattern.permute.xlu1 %v2570_v51 }
 0x105   :  { %566 = vperm.xlu1 %1452, %v1621_v14   ;;  %v835_v14 = vld [vmem:[%s2516_s2 + $0x50] sm:$0xff] }
 0x106   :  { %v1988_v13 = vpop.permute.xlu1 %416 }
 0x107   :  { %2579 = vst [vmem:[#allocation42_spill] sm:$0xff] %v1988_v13  ;;  %v1990_v41 = vpop.permute.xlu0 %444 }
 0x109   :  { %570 = vperm.xlu1 %1452, %v1628_v15  }
 0x10a   :  { %v1993_v27 = vpop.permute.xlu1 %424 }
 0x10b   :  { %2580 = vst [vmem:[#allocation43_spill] sm:$0xff] %v1993_v27  ;;  %v1995_v6 = vpop.permute.xlu0 %452 }
 0x10d   :  { %1453 = vset.pattern.permute.xlu1 %v2574_v10 }
 0x10e   :  { %724 = vperm.xlu1 %1453, %v1628_v15   ;;  %v1999_v28 = vpop.permute.xlu1 %432 }
 0x10f   :  { %2581 = vst [vmem:[#allocation44_spill] sm:$0xff] %v1999_v28  ;;  %v2001_v30 = vpop.permute.xlu0 %456  ;;  %v311_v28 = vsub.s32 1, %v2013_v39 }
 0x110   :  { %2582 = vst [vmem:[#allocation45_spill] sm:$0xff] %v2001_v30  ;;  %v2535_v30 = vsub.s32 0, %v2013_v39 }
 0x112   :  { %1454 = vset.pattern.permute.xlu1 %v2566_v54  ;;  %v2007_v13 = vpop.permute.xlu1 %440 }
 0x113   :  { %2583 = vst [vmem:[#allocation46_spill] sm:$0xff] %v2007_v13  ;;  %902 = vperm.xlu1 %1454, %v835_v14   ;;  %v465_v13 = vsub.s32 2, %v2013_v39  ;;  %v2027_v14 = vld [vmem:[%s2514_s0] sm:$0x1f] }
 0x114   :  { %v2009_v27 = vpop.permute.xlu0 %57 }
 0x115   :  { %v2041_v5 = vrot.slane %v2027_v14, %v465_v13  ;;  %v837_v13 = vld [vmem:[%s2516_s2 + $0x60] sm:$0xff] }
 0x116   :  { %v2011_v8 = vpop.permute.xlu1 %448 }
 0x117   :  { %2584 = vst [vmem:[#allocation47_spill] sm:$0xff] %v2011_v8  ;;  %1455 = vset.pattern.permute.xlu1 %v2570_v51  ;;  %v2038_v8 = vrot.slane %v2027_v14, %v311_v28  ;;  %v473_v37 = vmul.f32 %v2041_v5, %v1941_v29 }
 0x118   :  { %v2016_v15 = vpop.permute.xlu0 %62  ;;  %574 = vperm.xlu1 %1455, %v1633_v16   ;;  %v2035_v16 = vrot.slane %v2027_v14, %v2535_v30 }
 0x119   :  { %v319_v11 = vmul.f32 %v2038_v8, %v1760_v36  ;;  %v321_v63 = vmul.f32 %v2038_v8, %v1766_v38  ;;  %v475_v36 = vmul.f32 %v2041_v5, %v1949_v49 }
 0x11b   :  { %v2022_v25 = vpop.permute.xlu1 %518 }
 0x11c   :  { %v2029_v26 = vpop.permute.xlu0 %77  ;;  %578 = vperm.xlu1 %1455, %v1640_v17  }
 0x120   :  { %v88_v2 = vpop.permute.xlu0 %87  ;;  %1456 = vset.pattern.permute.xlu1 %v2574_v10  ;;  %v2044_v24 = vpop.permute.xlu1 %672 }
 0x121   :  { %v190_v30 = vmul.f32 %v2035_v16, %v88_v2  ;;  %732 = vperm.xlu1 %1456, %v1640_v17   ;;  %v323_v2 = vmul.f32 %v2038_v8, %v1772_v40  ;;  %v479_v40 = vmul.f32 %v2041_v5, %v1962_v7 }
 0x123   :  { %v344_v28 = vadd.f32 %v319_v11, %v190_v30  ;;  %v477_v11 = vmul.f32 %v2041_v5, %v1955_v45 }
 0x124   :  { %v98_v1 = vpop.permute.xlu0 %97  ;;  %v2055_v23 = vpop.permute.xlu1 %676 }
 0x125   :  { %v2061_v22 = vadd.f32 %v473_v37, %v344_v28  ;;  %v192_v29 = vmul.f32 %v2035_v16, %v98_v1  ;;  %1457 = vset.pattern.permute.xlu1 %v2566_v54 }
 0x126   :  { %912 = vperm.xlu1 %1457, %v837_v13  }
 0x127   :  { %v346_v17 = vadd.f32 %v321_v63, %v192_v29  ;;  %v325_v63 = vmul.f32 %v2038_v8, %v1778_v42 }
 0x128   :  { %v108_v30 = vpop.permute.xlu0 %107 }
 0x129   :  { %v194_v38 = vmul.f32 %v2035_v16, %v108_v30  ;;  %v2070_v3 = vpop.permute.xlu1 %530  ;;  %v2072_v49 = vadd.f32 %v475_v36, %v346_v17  ;;  %v481_v17 = vmul.f32 %v2041_v5, %v1968_v12 }
 0x12a   :  { %1458 = vset.pattern.permute.xlu1 %v2570_v51 }
 0x12b   :  { %v348_v37 = vadd.f32 %v323_v2, %v194_v38  ;;  %582 = vperm.xlu1 %1458, %v1645_v18   ;;  %v327_v18 = vmul.f32 %v2038_v8, %v1785_v44  ;;  %v329_v38 = vmul.f32 %v2038_v8, %v1791_v46  ;;  %v483_v44 = vmul.f32 %v2041_v5, %v1977_v43 }
 0x12c   :  { %v118_v1 = vpop.permute.xlu0 %117  ;;  %v184_v46 = vmul.f32 %v2035_v16, %v2009_v27  ;;  %v315_v27 = vmul.f32 %v2038_v8, %v1832_v58  ;;  %v469_v58 = vmul.f32 %v2041_v5, %v1944_v53 }
 0x12d   :  { %v196_v45 = vmul.f32 %v2035_v16, %v118_v1  ;;  %v2081_v28 = vadd.f32 %v477_v11, %v348_v37  ;;  %v839_v1 = vld [vmem:[%s2516_s2 + $0x70] sm:$0xff] }
 0x12e   :  { %v2083_v13 = vpop.permute.xlu1 %684 }
 0x12f   :  { %v350_v36 = vadd.f32 %v325_v63, %v196_v45  ;;  %586 = vperm.xlu1 %1458, %v1652_v19   ;;  %v619_v63 = vsub.s32 3, %v2013_v39 }
 0x130   :  { %v128_v29 = vpop.permute.xlu0 %127 }
 0x131   :  { %v198_v42 = vmul.f32 %v2035_v16, %v128_v29  ;;  %v2091_v30 = vadd.f32 %v479_v40, %v350_v36  ;;  %v485_v36 = vmul.f32 %v2041_v5, %v1983_v55  ;;  %v185_v29 = vmul.f32 %v2035_v16, %v2016_v15 }
 0x132   :  { %v314_v55 = vmul.f32 %v2038_v8, %v1748_v32  ;;  %v2132_v15 = vrot.slane %v2027_v14, %v619_v63 }
 0x133   :  { %v352_v7 = vadd.f32 %v327_v18, %v198_v42  ;;  %1459 = vset.pattern.permute.xlu1 %v2574_v10  ;;  %v2094_v2 = vpop.permute.xlu1 %852  ;;  %v773_v42 = vsub.s32 4, %v2013_v39 }
 0x134   :  { %v138_v11 = vpop.permute.xlu0 %137  ;;  %740 = vperm.xlu1 %1459, %v1652_v19   ;;  %v331_v19 = vmul.f32 %v2038_v8, %v1797_v48  ;;  %v313_v48 = vmul.f32 %v2038_v8, %v1825_v56  ;;  %v468_v56 = vmul.f32 %v2041_v5, %v1921_v9  ;;  %v339_v32 = vadd.f32 %v314_v55, %v185_v29 }
 0x135   :  { %v200_v12 = vmul.f32 %v2035_v16, %v138_v11  ;;  %v2102_v37 = vadd.f32 %v481_v17, %v352_v7  ;;  %v186_v7 = vmul.f32 %v2035_v16, %v1745_v31  ;;  %v487_v31 = vmul.f32 %v2041_v5, %v1990_v41 }
 0x136   :  { %v2151_v53 = vrot.slane %v2027_v14, %v773_v42  ;;  %v622_v41 = vmul.f32 %v2132_v15, %v1827_v57  ;;  %v489_v29 = vmul.f32 %v2041_v5, %v1995_v6 }
 0x137   :  { %v354_v40 = vadd.f32 %v329_v38, %v200_v12  ;;  %v333_v38 = vmul.f32 %v2038_v8, %v1803_v50  ;;  %v335_v50 = vmul.f32 %v2038_v8, %v1810_v52  ;;  %v340_v9 = vadd.f32 %v315_v27, %v186_v7 }
 0x138   :  { %v148_v45 = vpop.permute.xlu0 %147  ;;  %1460 = vset.pattern.permute.xlu1 %v2566_v54  ;;  %v2113_v43 = vpop.permute.xlu1 %534  ;;  %v316_v52 = vmul.f32 %v2038_v8, %v1838_v60  ;;  %v775_v57 = vmul.f32 %v2151_v53, %v2044_v24  ;;  %v470_v60 = vmul.f32 %v2041_v5, %v1953_v4  ;;  %v776_v42 = vmul.f32 %v2151_v53, %v2055_v23 }
 0x139   :  { %v202_v18 = vmul.f32 %v2035_v16, %v148_v45  ;;  %922 = vperm.xlu1 %1460, %v839_v1   ;;  %v2120_v17 = vadd.f32 %v483_v44, %v354_v40  ;;  %v338_v44 = vadd.f32 %v313_v48, %v184_v46  ;;  %v623_v46 = vmul.f32 %v2132_v15, %v1834_v59 }
 0x13a   :  { %v621_v45 = vmul.f32 %v2132_v15, %v2022_v25  ;;  %v494_v14 = vadd.f32 %v469_v58, %v340_v9  ;;  %v187_v25 = vmul.f32 %v2035_v16, %v1751_v33  ;;  %v777_v24 = vmul.f32 %v2151_v53, %v1840_v61  ;;  %v841_v9 = vld [vmem:[%s2516_s2 + $0x80] sm:$0xff] }
 0x13b   :  { %v356_v11 = vadd.f32 %v331_v19, %v202_v18  ;;  %v467_v19 = vmul.f32 %v2041_v5, %v1933_v0  ;;  %v624_v33 = vmul.f32 %v2132_v15, %v2070_v3  ;;  %v778_v23 = vmul.f32 %v2151_v53, %v2083_v13 }
 0x13c   :  { %v158_v12 = vpop.permute.xlu0 %157  ;;  %v2140_v1 = vpop.permute.xlu1 %538  ;;  %v341_v55 = vadd.f32 %v316_v52, %v187_v25 }
 0x13d   :  { %v204_v63 = vmul.f32 %v2035_v16, %v158_v12  ;;  %1461 = vset.pattern.permute.xlu1 %v2570_v51  ;;  %v2146_v40 = vadd.f32 %v485_v36, %v356_v11  ;;  %v492_v0 = vadd.f32 %v467_v19, %v338_v44  ;;  %v188_v19 = vmul.f32 %v2035_v16, %v2029_v26 }
 0x13e   :  { %590 = vperm.xlu1 %1461, %v1657_v20   ;;  %v493_v20 = vadd.f32 %v468_v56, %v339_v32  ;;  %v495_v12 = vadd.f32 %v470_v60, %v341_v55  ;;  %v189_v26 = vmul.f32 %v2035_v16, %v1757_v35  ;;  %v625_v60 = vmul.f32 %v2132_v15, %v2113_v43 }
 0x13f   :  { %v358_v36 = vadd.f32 %v333_v38, %v204_v63  ;;  %v646_v6 = vadd.f32 %v621_v45, %v492_v0  ;;  %v648_v38 = vadd.f32 %v623_v46, %v494_v14  ;;  %v471_v0 = vmul.f32 %v2041_v5, %v1929_v47 }
 0x140   :  { %v168_v18 = vpop.permute.xlu0 %167  ;;  %v647_v58 = vadd.f32 %v622_v41, %v493_v20  ;;  %v649_v63 = vadd.f32 %v624_v33, %v495_v12  ;;  %v2586_v35 = vmov 0.0|0.0  }
 0x141   :  { %v206_v48 = vmul.f32 %v2035_v16, %v168_v18  ;;  %v693_v59 = vpop.permute.xlu1 %692  ;;  %v2169_v27 = vadd.f32 %v487_v31, %v358_v36  ;;  %v800_v56 = vadd.f32 %v775_v57, %v646_v6  ;;  %v318_v36 = vmul.f32 %v2038_v8, %v1844_v62  ;;  %v2585_v18 = vld [vmem:[#allocation38_spill] sm:$0xff] }
 0x142   :  { %594 = vperm.xlu1 %1461, %v1664_v21   ;;  %v801_v61 = vadd.f32 %v776_v42, %v647_v58  ;;  %v472_v20 = vmul.f32 %v2041_v5, %v2585_v18  ;;  %v626_v6 = vmul.f32 %v2132_v15, %v2140_v1  ;;  %v2587_v42 = vld [vmem:[#allocation6_spill] sm:$0xff] }
 0x143   :  { %v360_v7 = vadd.f32 %v335_v50, %v206_v48  ;;  %v975_v31 = vadd.f32 %v2094_v2, %v800_v56  ;;  %v802_v50 = vadd.f32 %v777_v24, %v648_v38  ;;  %v317_v2 = vmul.f32 %v2038_v8, %v1754_v34  ;;  %v2588_v38 = vld [vmem:[#allocation21_spill] sm:$0xff] }
 0x144   :  { %v2180_v11 = vpop.permute.xlu0 %177  ;;  %v343_v62 = vadd.f32 %v318_v36, %v189_v26  ;;  %v780_v24 = vmul.f32 %v2151_v53, %v693_v59  ;;  %v779_v43 = vmul.f32 %v2151_v53, %v2588_v38  ;;  %v2596_v38 = vld [vmem:[#allocation9_spill] sm:$0xff] }
 0x145   :  { %v2184_v44 = vadd.f32 %v489_v29, %v360_v7  ;;  %v1000_v41 = vmax.f32 %v975_v31, 0.0  ;;  %v342_v57 = vadd.f32 %v317_v2, %v188_v19  ;;  %v844_v2 = vld [vmem:[%s2516_s2 + $0x98] sm:$0xff] }
 0x146   :  { %1463 = vset.pattern.permute.xlu1 %v2574_v10  ;;  %v863_v4 = vpop.permute.xlu1 %862  ;;  %v497_v7 = vadd.f32 %v472_v20, %v343_v62 }
 0x147   :  { %748 = vperm.xlu1 %1463, %v1664_v21   ;;  %v977_v46 = vadd.f32 %v863_v4, %v802_v50  ;;  %v803_v21 = vadd.f32 %v778_v23, %v649_v63  ;;  %v496_v55 = vadd.f32 %v471_v0, %v342_v57  ;;  %v2589_v4 = vld [vmem:[#allocation7_spill] sm:$0xff]  ;;  %v2590_v50 = vld [vmem:[#allocation22_spill] sm:$0xff] }
 0x148   :  { %v858_v32 = vpop.permute.xlu0 %857  ;;  %v651_v1 = vadd.f32 %v626_v6, %v497_v7 }
 0x149   :  { %v976_v3 = vadd.f32 %v858_v32, %v801_v61  ;;  %v1002_v48 = vmax.f32 %v977_v46, 0.0  ;;  %v650_v33 = vadd.f32 %v625_v60, %v496_v55  ;;  %v2595_v55 = vld [vmem:[#allocation24_spill] sm:$0xff] }
 0x14a   :  { %v805_v12 = vadd.f32 %v780_v24, %v651_v1 }
 0x14b   :  { %v1001_v45 = vmax.f32 %v976_v3, 0.0  ;;  %1464 = vset.pattern.permute.xlu1 %v2566_v54  ;;  %v2197_v13 = vpop.permute.xlu1 %542  ;;  %v804_v31 = vadd.f32 %v779_v43, %v650_v33  ;;  %v320_v3 = vmul.f32 %v2038_v8, %v2590_v50  ;;  %v2597_v33 = vld [vmem:[#allocation12_spill] sm:$0xff] }
 0x14c   :  { %v868_v52 = vpop.permute.xlu0 %867  ;;  %932 = vperm.xlu1 %1464, %v841_v9   ;;  %v627_v26 = vmul.f32 %v2132_v15, %v2197_v13  ;;  %v193_v1 = vmul.f32 %v2035_v16, %v2597_v33  ;;  %v1045_v33 = vld [vmem:[%s2518_s4 + $0x10] sm:$0xff] }
 0x14d   :  { %v978_v14 = vadd.f32 %v868_v52, %v803_v21  ;;  %v1360_v29 = vpack.c.bf16 %v1001_v45, %v1000_v41  ;;  %v2591_v41 = vld [vmem:[#allocation11_spill] sm:$0xff] }
 0x14e   :  { %v191_v46 = vmul.f32 %v2035_v16, %v2591_v41  ;;  %v2592_v45 = vld [vmem:[#allocation39_spill] sm:$0xff]  ;;  %v652_v20 = vadd.f32 %v627_v26, %v2061_v22  ;;  %v2600_v41 = vld [vmem:[#allocation10_spill] sm:$0xff] }
 0x14f   :  { %v1003_v25 = vmax.f32 %v978_v14, 0.0  ;;  %v547_v34 = vpop.permute.xlu1 %546  ;;  %1361 = vmatpush1.bf16.msra.mxu0 %v1360_v29  ;;  %1408 = vmatpush1.bf16.msra.mxu1 %v1360_v29  ;;  %v474_v21 = vmul.f32 %v2041_v5, %v2592_v45 }
 0x150   :  { %1465 = vset.pattern.permute.xlu1 %v2570_v51  ;;  %1362 = vmatprep.subr.bf16.mxu0 %v2586_v35  ;;  %v878_v58 = vpop.permute.xlu0 %877  ;;  %v345_v36 = vadd.f32 %v320_v3, %v191_v46  ;;  %v628_v52 = vmul.f32 %v2132_v15, %v547_v34  ;;  %v2594_v34 = vld [vmem:[#allocation23_spill] sm:$0xff]  ;;  %v2599_v3 = vmov 2   ;;  %v2601_v46 = vld [vmem:[#allocation25_spill] sm:$0xff] }
 0x151   :  { %v1363_v47 = vpack.c.bf16 %v1003_v25, %v1002_v48  ;;  %598 = vperm.xlu1 %1465, %v2587_v42   ;;  %1396 = vmatprep.subr.bf16.mxu1 %v2586_v35  ;;  %v980_v23 = vadd.f32 %v878_v58, %v805_v12  ;;  %v2593_v25 = vld [vmem:[#allocation8_spill] sm:$0xff]  ;;  %v781_v62 = vmul.f32 %v2151_v53, %v2594_v34  ;;  %v2604_v34 = vld [vmem:[#allocation41_spill] sm:$0xff] }
 0x152   :  { %v499_v29 = vadd.f32 %v474_v21, %v345_v36  ;;  %v783_v45 = vmul.f32 %v2151_v53, %v2601_v46 }
 0x153   :  { %1364 = vmatpush1.bf16.msra.mxu0 %v1363_v47  ;;  %1409 = vmatpush1.bf16.msra.mxu1 %v1363_v47  ;;  %v1005_v32 = vmax.f32 %v980_v23, 0.0  ;;  %v806_v47 = vadd.f32 %v781_v62, %v652_v20  ;;  %v849_v62 = vld [vmem:[%s2516_s2 + $0xc0] sm:$0xff] }
 0x154   :  { %v701_v56 = vpop.permute.xlu1 %700  ;;  %1365 = vmatprep.subr.bf16.mxu0 %v2586_v35  ;;  %1397 = vmatprep.subr.bf16.mxu1 %v2586_v35  ;;  %v653_v18 = vadd.f32 %v628_v52, %v499_v29  ;;  %v888_v60 = vpop.permute.xlu0 %887 }
 0x155   :  { %602 = vperm.xlu1 %1465, %v2589_v4   ;;  %v782_v0 = vmul.f32 %v2151_v53, %v701_v56  ;;  %v2598_v56 = vld [vmem:[#allocation40_spill] sm:$0xff] }
 0x156   :  { %v476_v58 = vmul.f32 %v2041_v5, %v2598_v56  ;;  %v2605_v56 = vld [vmem:[#allocation27_spill] sm:$0xff] }
 0x157   :  { %v807_v57 = vadd.f32 %v782_v0, %v653_v18  ;;  %v2602_v0 = vld [vmem:[#allocation26_spill] sm:$0xff] }
 0x158   :  { %v898_v21 = vpop.permute.xlu0 %897  ;;  %v324_v18 = vmul.f32 %v2038_v8, %v2602_v0 }
 0x159   :  { %1467 = vset.pattern.permute.xlu1 %v2574_v10  ;;  %v873_v59 = vpop.permute.xlu1 %872  ;;  %v982_v6 = vadd.f32 %v888_v60, %v807_v57 }
 0x15a   :  { %v979_v61 = vadd.f32 %v873_v59, %v804_v31  ;;  %752 = vperm.xlu1 %1467, %v2587_v42  }
 0x15b   :  { %v1007_v7 = vmax.f32 %v982_v6, 0.0 }
 0x15c   :  { %v1004_v63 = vmax.f32 %v979_v61, 0.0 }
 0x15e   :  { %v1366_v9 = vpack.c.bf16 %v1005_v32, %v1004_v63  ;;  %756 = vperm.xlu1 %1467, %v2589_v4   ;;  %v551_v19 = vpop.permute.xlu1 %550 }
 0x15f   :  { %v629_v59 = vmul.f32 %v2132_v15, %v551_v19  ;;  %v847_v19 = vld [vmem:[%s2516_s2 + $0xb0] sm:$0xff] }
 0x160   :  { %1367 = vmatpush1.bf16.msra.mxu0 %v1366_v9  ;;  %1410 = vmatpush1.bf16.msra.mxu1 %v1366_v9 }
 0x161   :  { %1368 = vmatprep.subr.bf16.mxu0 %v2586_v35  ;;  %1398 = vmatprep.subr.bf16.mxu1 %v2586_v35  ;;  %v654_v63 = vadd.f32 %v629_v59, %v2072_v49 }
 0x162   :  { %1468 = vset.pattern.permute.xlu1 %v2566_v54  ;;  %v555_v14 = vpop.permute.xlu1 %554 }
 0x163   :  { %947 = vperm.xlu1 %1468, %v844_v2   ;;  %v630_v12 = vmul.f32 %v2132_v15, %v555_v14  ;;  %v808_v36 = vadd.f32 %v783_v45, %v654_v63  ;;  %v848_v14 = vld [vmem:[%s2516_s2 + $0xb8] sm:$0xff]  ;;  %v2608_v45 = vld [vmem:[#allocation42_spill] sm:$0xff] }
 0x164   :  { %v2606_v63 = vld [vmem:[#allocation28_spill] sm:$0xff] }
 0x167   :  { %1469 = vset.pattern.permute.xlu1 %v2570_v51  ;;  %v709_v48 = vpop.permute.xlu1 %708  ;;  %v322_v51 = vmul.f32 %v2038_v8, %v2595_v55 }
 0x168   :  { %606 = vperm.xlu1 %1469, %v2593_v25   ;;  %v784_v61 = vmul.f32 %v2151_v53, %v709_v48  ;;  %v2603_v48 = vld [vmem:[#allocation13_spill] sm:$0xff] }
 0x169   :  { %v347_v4 = vadd.f32 %v322_v51, %v193_v1  ;;  %v1036_v1 = vld [vmem:[%s2517_s3 + $0x58] sm:$0xff] }
 0x16a   :  { %1355 = vmatprep.mubr.msk.f32.mxu1 %vm1097_vm0, %v1036_v1 }
 0x16b   :  { %v501_v31 = vadd.f32 %v476_v58, %v347_v4  ;;  %v785_v58 = vmul.f32 %v2151_v53, %v2605_v56 }
 0x16c   :  { %1470 = vset.pattern.permute.xlu1 %v2574_v10  ;;  %v883_v13 = vpop.permute.xlu1 %882  ;;  %v846_v10 = vld [vmem:[%s2516_s2 + $0xa8] sm:$0xff] }
 0x16d   :  { %v981_v42 = vadd.f32 %v883_v13, %v806_v47  ;;  %760 = vperm.xlu1 %1470, %v2593_v25   ;;  %v655_v32 = vadd.f32 %v630_v12, %v501_v31  ;;  %v195_v25 = vmul.f32 %v2035_v16, %v2603_v48  ;;  %v1046_v12 = vld [vmem:[%s2518_s4 + $0x18] sm:$0xff] }
 0x16f   :  { %v1006_v22 = vmax.f32 %v981_v42, 0.0  ;;  %v809_v50 = vadd.f32 %v784_v61, %v655_v32  ;;  %v349_v60 = vadd.f32 %v324_v18, %v195_v25  ;;  %v1245_v32 = vld [vmem:[%s2519_s5 + $0x8] sm:$0xff]  ;;  %v1248_v25 = vld [vmem:[%s2519_s5 + $0x20] sm:$0xff] }
 0x171   :  { %v1369_v24 = vpack.c.bf16 %v1007_v7, %v1006_v22  ;;  %764 = vperm.xlu1 %1470, %v2596_v38   ;;  %v559_v43 = vpop.permute.xlu1 %558  ;;  %v984_v2 = vadd.f32 %v898_v21, %v809_v50  ;;  %v1043_v22 = vld [vmem:[%s2518_s4] sm:$0xff]  ;;  %v326_v50 = vmul.f32 %v2038_v8, %v2606_v63  ;;  %v480_v21 = vmul.f32 %v2041_v5, %v2608_v45 }
 0x172   :  { %v631_v42 = vmul.f32 %v2132_v15, %v559_v43  ;;  %v1026_v43 = vld [vmem:[%s2517_s3 + $0x8] sm:$0xff] }
 0x173   :  { %1370 = vmatpush1.bf16.msra.mxu0 %v1369_v24  ;;  %1411 = vmatpush1.bf16.msra.mxu1 %v1369_v24  ;;  %v1009_v26 = vmax.f32 %v984_v2, 0.0 }
 0x174   :  { %1371 = vmatprep.subr.bf16.mxu0 %v2586_v35  ;;  %1399 = vmatprep.subr.bf16.mxu1 %v2586_v35  ;;  %v656_v51 = vadd.f32 %v631_v42, %v2081_v28  ;;  %v908_v28 = vpop.permute.xlu0 %907 }
 0x175   :  { %1472 = vset.pattern.permute.xlu1 %v2566_v54  ;;  %v563_v23 = vpop.permute.xlu1 %562  ;;  %1350 = vmatprep.mubr.msk.f32.mxu0 %vm1097_vm0, %v1026_v43  ;;  %v2612_v43 = vld [vmem:[#allocation43_spill] sm:$0xff] }
 0x176   :  { %957 = vperm.xlu1 %1472, %v846_v10   ;;  %v632_v6 = vmul.f32 %v2132_v15, %v563_v23  ;;  %v810_v4 = vadd.f32 %v785_v58, %v656_v51  ;;  %v482_v1 = vmul.f32 %v2041_v5, %v2612_v43  ;;  %v2618_v43 = vld [vmem:[#allocation33_spill] sm:$0xff] }
 0x17a   :  { %1473 = vset.pattern.permute.xlu1 %v2599_v3  ;;  %v717_v9 = vpop.permute.xlu1 %716 }
 0x17b   :  { %460 = vperm.xlu1 %1473, %v2600_v41   ;;  %v786_v7 = vmul.f32 %v2151_v53, %v717_v9  ;;  %v2607_v41 = vld [vmem:[#allocation14_spill] sm:$0xff] }
 0x17c   :  { %v197_v46 = vmul.f32 %v2035_v16, %v2607_v41  ;;  %v1047_v41 = vld [vmem:[%s2518_s4 + $0x20] sm:$0xff] }
 0x17e   :  { %v351_v2 = vadd.f32 %v326_v50, %v197_v46 }
 0x17f   :  { %1474 = vset.pattern.permute.xlu1 %v2566_v54  ;;  %v893_v52 = vpop.permute.xlu1 %892  ;;  %v478_v54 = vmul.f32 %v2041_v5, %v2604_v34  ;;  %v2609_v34 = vld [vmem:[#allocation29_spill] sm:$0xff] }
 0x180   :  { %v983_v49 = vadd.f32 %v893_v52, %v808_v36  ;;  %962 = vperm.xlu1 %1474, %v847_v19   ;;  %v1246_v19 = vld [vmem:[%s2519_s5 + $0x10] sm:$0xff] }
 0x181   :  { %v503_v13 = vadd.f32 %v478_v54, %v349_v60  ;;  %v918_v54 = vpop.permute.xlu0 %917 }
 0x182   :  { %v1008_v29 = vmax.f32 %v983_v49, 0.0  ;;  %v505_v49 = vadd.f32 %v480_v21, %v351_v2 }
 0x183   :  { %v657_v55 = vadd.f32 %v632_v6, %v503_v13 }
 0x184   :  { %v1372_v20 = vpack.c.bf16 %v1009_v26, %v1008_v29  ;;  %967 = vperm.xlu1 %1474, %v848_v14   ;;  %v567_v57 = vpop.permute.xlu1 %566  ;;  %v1247_v26 = vld [vmem:[%s2519_s5 + $0x18] sm:$0xff] }
 0x185   :  { %v811_v24 = vadd.f32 %v786_v7, %v657_v55  ;;  %v633_v14 = vmul.f32 %v2132_v15, %v567_v57  ;;  %v787_v57 = vmul.f32 %v2151_v53, %v2609_v34  ;;  %v2610_v7 = vld [vmem:[#allocation30_spill] sm:$0xff]  ;;  %v1250_v55 = vld [vmem:[%s2519_s5 + $0x30] sm:$0xff]  ;;  %v928_v46 = vpop.permute.xlu0 %927 }
 0x186   :  { %1373 = vmatpush1.bf16.msra.mxu0 %v1372_v20  ;;  %1412 = vmatpush1.bf16.msra.mxu1 %v1372_v20  ;;  %v1049_v34 = vld [vmem:[%s2518_s4 + $0x30] sm:$0xff] }
 0x187   :  { %1374 = vmatprep.subr.bf16.mxu0 %v2586_v35  ;;  %1400 = vmatprep.subr.bf16.mxu1 %v2586_v35  ;;  %v986_v10 = vadd.f32 %v908_v28, %v811_v24  ;;  %v658_v18 = vadd.f32 %v633_v14, %v2091_v30  ;;  %v1252_v28 = vld [vmem:[%s2519_s5 + $0x40] sm:$0x3f] }
 0x188   :  { %972 = vperm.xlu1 %1474, %v849_v62   ;;  %v571_v47 = vpop.permute.xlu1 %570 }
 0x189   :  { %v1011_v61 = vmax.f32 %v986_v10, 0.0  ;;  %v634_v36 = vmul.f32 %v2132_v15, %v571_v47  ;;  %v812_v60 = vadd.f32 %v787_v57, %v658_v18  ;;  %v1249_v47 = vld [vmem:[%s2519_s5 + $0x28] sm:$0xff] }
 0x18b   :  { %v659_v0 = vadd.f32 %v634_v36, %v505_v49  ;;  %v2614_v36 = vld [vmem:[#allocation32_spill] sm:$0xff] }
 0x18c   :  { %1054 = vperm.xlu1 %1474, %v1043_v22   ;;  %v328_v22 = vmul.f32 %v2038_v8, %v2610_v7 }
 0x18d   :  { %v725_v38 = vpop.permute.xlu1 %724 }
 0x18e   :  { %v788_v29 = vmul.f32 %v2151_v53, %v725_v38  ;;  %v2611_v38 = vld [vmem:[#allocation15_spill] sm:$0xff] }
 0x190   :  { %1064 = vperm.xlu1 %1474, %v1045_v33   ;;  %v813_v20 = vadd.f32 %v788_v29, %v659_v0  ;;  %v199_v33 = vmul.f32 %v2035_v16, %v2611_v38  ;;  %v2615_v29 = vld [vmem:[#allocation16_spill] sm:$0xff] }
 0x192   :  { %v903_v23 = vpop.permute.xlu1 %902  ;;  %v988_v62 = vadd.f32 %v918_v54, %v813_v20  ;;  %v353_v56 = vadd.f32 %v328_v22, %v199_v33  ;;  %v2616_v20 = vld [vmem:[#allocation44_spill] sm:$0xff]  ;;  %v2617_v54 = vld [vmem:[#allocation35_spill] sm:$0xff]  ;;  %v1051_v33 = vld [vmem:[%s2518_s4 + $0x40] sm:$0x3f] }
 0x193   :  { %v985_v31 = vadd.f32 %v903_v23, %v810_v4  ;;  %v1050_v22 = vld [vmem:[%s2518_s4 + $0x38] sm:$0xff] }
 0x194   :  { %1069 = vperm.xlu1 %1474, %v1046_v12   ;;  %v1013_v42 = vmax.f32 %v988_v62, 0.0  ;;  %v507_v4 = vadd.f32 %v482_v1, %v353_v56  ;;  %v793_v62 = vmul.f32 %v2151_v53, %v2617_v54  ;;  %v938_v1 = vpop.permute.xlu0 %937  ;;  %v2623_v54 = vld [vmem:[#allocation18_spill] sm:$0xff] }
 0x195   :  { %v1010_v59 = vmax.f32 %v985_v31, 0.0  ;;  %v1044_v31 = vld [vmem:[%s2518_s4 + $0x8] sm:$0xff] }
 0x196   :  { %1059 = vperm.xlu0 %1476, %v1044_v31  }
 0x197   :  { %v1375_v3 = vpack.c.bf16 %v1011_v61, %v1010_v59  ;;  %v575_v9 = vpop.permute.xlu1 %574  ;;  %v1244_v61 = vld [vmem:[%s2519_s5] sm:$0xff] }
 0x198   :  { %1260 = vperm.xlu1 %1474, %v1245_v32   ;;  %v635_v12 = vmul.f32 %v2132_v15, %v575_v9 }
 0x199   :  { %1376 = vmatpush1.bf16.msra.mxu0 %v1375_v3  ;;  %1413 = vmatpush1.bf16.msra.mxu1 %v1375_v3  ;;  %v2613_v3 = vld [vmem:[#allocation31_spill] sm:$0xff] }
 0x19a   :  { %1377 = vmatprep.subr.bf16.mxu0 %v2586_v35  ;;  %1401 = vmatprep.subr.bf16.mxu1 %v2586_v35  ;;  %v660_v32 = vadd.f32 %v635_v12, %v2102_v37  ;;  %v789_v9 = vmul.f32 %v2151_v53, %v2613_v3  ;;  %v1048_v37 = vld [vmem:[%s2518_s4 + $0x28] sm:$0xff] }
 0x19b   :  { %v579_v52 = vpop.permute.xlu1 %578  ;;  %1255 = vperm.xlu0 %1476, %v1244_v61  }
 0x19c   :  { %1265 = vperm.xlu1 %1474, %v1246_v19   ;;  %v636_v58 = vmul.f32 %v2132_v15, %v579_v52  ;;  %v814_v21 = vadd.f32 %v789_v9, %v660_v32  ;;  %v330_v52 = vmul.f32 %v2038_v8, %v2614_v36  ;;  %v2619_v32 = vld [vmem:[#allocation34_spill] sm:$0xff] }
 0x19d   :  { %v2621_v9 = vld [vmem:[#allocation46_spill] sm:$0xff] }
 0x19e   :  { %v661_v59 = vadd.f32 %v636_v58, %v507_v4 }
 0x19f   :  { %1074 = vperm.xlu0 %1476, %v1047_v41   ;;  %v486_v41 = vmul.f32 %v2041_v5, %v2621_v9 }
 0x1a0   :  { %1270 = vperm.xlu1 %1474, %v1247_v26   ;;  %v733_v48 = vpop.permute.xlu1 %732  ;;  %v201_v26 = vmul.f32 %v2035_v16, %v2615_v29 }
 0x1a1   :  { %v790_v23 = vmul.f32 %v2151_v53, %v733_v48  ;;  %v484_v48 = vmul.f32 %v2041_v5, %v2616_v20 }
 0x1a2   :  { %v355_v57 = vadd.f32 %v330_v52, %v201_v26  ;;  %v943_v52 = vpop.permute.xlu0 %942 }
 0x1a3   :  { %v815_v63 = vadd.f32 %v790_v23, %v661_v59  ;;  %1079 = vperm.xlu0 %1476, %v1048_v37   ;;  %v1323_v23 = vld [vmem:[#allocation2] sm:$0x1] }
 0x1a4   :  { %1275 = vperm.xlu1 %1474, %v1248_v25  }
 0x1a5   :  { %v913_v6 = vpop.permute.xlu1 %912  ;;  %v990_v45 = vadd.f32 %v928_v46, %v815_v63  ;;  %v332_v63 = vmul.f32 %v2038_v8, %v2619_v32  ;;  %v2628_v32 = vld [vmem:[#allocation20_spill] sm:$0xff] }
 0x1a6   :  { %v987_v30 = vadd.f32 %v913_v6, %v812_v60 }
 0x1a7   :  { %v1015_v14 = vmax.f32 %v990_v45, 0.0  ;;  %1084 = vperm.xlu0 %1476, %v1049_v34  }
 0x1a8   :  { %v1012_v13 = vmax.f32 %v987_v30, 0.0  ;;  %1280 = vperm.xlu1 %1474, %v1249_v47   ;;  %v509_v30 = vadd.f32 %v484_v48, %v355_v57 }
 0x1aa   :  { %v1378_v51 = vpack.c.bf16 %v1013_v42, %v1012_v13  ;;  %v583_v24 = vpop.permute.xlu1 %582 }
 0x1ab   :  { %v637_v13 = vmul.f32 %v2132_v15, %v583_v24  ;;  %1089 = vperm.xlu0 %1476, %v1050_v22   ;;  %v791_v24 = vmul.f32 %v2151_v53, %v2618_v43  ;;  %v953_v22 = vpop.permute.xlu0 %952 }
 0x1ac   :  { %1285 = vperm.xlu1 %1474, %v1250_v55   ;;  %1379 = vmatpush1.bf16.msra.mxu0 %v1378_v51 }
 0x1ad   :  { %1414 = vmatpush1.bf16.msra.mxu1 %v1378_v51  ;;  %1380 = vmatprep.subr.bf16.mxu0 %v2586_v35 }
 0x1ae   :  { %v587_v10 = vpop.permute.xlu1 %586  ;;  %1402 = vmatprep.subr.bf16.mxu1 %v2586_v35 }
 0x1af   :  { %v638_v60 = vmul.f32 %v2132_v15, %v587_v10  ;;  %1094 = vperm.xlu0 %1476, %v1051_v33  }
 0x1b0   :  { %1295 = vperm.xlu1 %1474, %v1252_v28   ;;  %v1251_v28 = vld [vmem:[%s2519_s5 + $0x38] sm:$0xff] }
 0x1b1   :  { %v663_v55 = vadd.f32 %v638_v60, %v509_v30  ;;  %v2624_v60 = vld [vmem:[#allocation47_spill] sm:$0xff] }
 0x1b3   :  { %v741_v50 = vpop.permute.xlu1 %740  ;;  %1290 = vperm.xlu0 %1476, %v1251_v28   ;;  %v2625_v28 = vld [vmem:[#allocation37_spill] sm:$0xff] }
 0x1b4   :  { %v792_v42 = vmul.f32 %v2151_v53, %v741_v50  ;;  %v2620_v50 = vld [vmem:[#allocation17_spill] sm:$0xff] }
 0x1b5   :  { %v203_v3 = vmul.f32 %v2035_v16, %v2620_v50 }
 0x1b6   :  { %v817_v51 = vadd.f32 %v792_v42, %v663_v55 }
 0x1b7   :  { %1326 = vperm.xlu0 %1476, %v1323_v23   ;;  %v357_v45 = vadd.f32 %v332_v63, %v203_v3  ;;  %v337_v63 = vmul.f32 %v2038_v8, %v2628_v32 }
 0x1b8   :  { %v923_v19 = vpop.permute.xlu1 %922  ;;  %v992_v56 = vadd.f32 %v938_v1, %v817_v51  ;;  %v611_v1 = vpop.permute.xlu0 %610 }
 0x1b9   :  { %v989_v2 = vadd.f32 %v923_v19, %v814_v21  ;;  %v511_v19 = vadd.f32 %v486_v41, %v357_v45  ;;  %v644_v45 = vmul.f32 %v2132_v15, %v611_v1 }
 0x1ba   :  { %v1017_v12 = vmax.f32 %v992_v56, 0.0 }
 0x1bb   :  { %v1014_v49 = vmax.f32 %v989_v2, 0.0 }
 0x1bd   :  { %v1381_v0 = vpack.c.bf16 %v1015_v14, %v1014_v49  ;;  %v591_v18 = vpop.permute.xlu1 %590 }
 0x1be   :  { %v639_v25 = vmul.f32 %v2132_v15, %v591_v18 }
 0x1bf   :  { %1382 = vmatpush1.bf16.msra.mxu0 %v1381_v0  ;;  %1415 = vmatpush1.bf16.msra.mxu1 %v1381_v0 }
 0x1c0   :  { %v664_v6 = vadd.f32 %v639_v25, %v2146_v40  ;;  %1383 = vmatprep.subr.bf16.mxu0 %v2586_v35  ;;  %1403 = vmatprep.subr.bf16.mxu1 %v2586_v35  ;;  %v662_v40 = vadd.f32 %v637_v13, %v2120_v17  ;;  %v2622_v25 = vld [vmem:[#allocation36_spill] sm:$0xff] }
 0x1c1   :  { %v595_v47 = vpop.permute.xlu1 %594  ;;  %v334_v34 = vmul.f32 %v2038_v8, %v2622_v25 }
 0x1c2   :  { %v818_v7 = vadd.f32 %v793_v62, %v664_v6  ;;  %v816_v58 = vadd.f32 %v791_v24, %v662_v40  ;;  %v640_v21 = vmul.f32 %v2132_v15, %v595_v47  ;;  %v205_v62 = vmul.f32 %v2035_v16, %v2623_v54 }
 0x1c3   :  { %v488_v6 = vmul.f32 %v2041_v5, %v2624_v60  ;;  %v1028_v60 = vld [vmem:[%s2517_s3 + $0x18] sm:$0xff] }
 0x1c4   :  { %v665_v36 = vadd.f32 %v640_v21, %v511_v19  ;;  %v993_v14 = vadd.f32 %v943_v52, %v818_v7  ;;  %v359_v13 = vadd.f32 %v334_v34, %v205_v62  ;;  %v1035_v62 = vld [vmem:[%s2517_s3 + $0x50] sm:$0xff] }
 0x1c6   :  { %v749_v38 = vpop.permute.xlu1 %748  ;;  %v1018_v0 = vmax.f32 %v993_v14, 0.0  ;;  %v513_v55 = vadd.f32 %v488_v6, %v359_v13  ;;  %v1038_v6 = vld [vmem:[%s2517_s3 + $0x68] sm:$0xff] }
 0x1c7   :  { %v794_v2 = vmul.f32 %v2151_v53, %v749_v38  ;;  %v1030_v13 = vld [vmem:[%s2517_s3 + $0x28] sm:$0xff] }
 0x1c9   :  { %v819_v49 = vadd.f32 %v794_v2, %v665_v36 }
 0x1cb   :  { %v933_v10 = vpop.permute.xlu1 %932 }
 0x1cc   :  { %v991_v4 = vadd.f32 %v933_v10, %v816_v58  ;;  %v336_v10 = vmul.f32 %v2038_v8, %v2625_v28 }
 0x1ce   :  { %v1016_v17 = vmax.f32 %v991_v4, 0.0 }
 0x1d0   :  { %v1384_v31 = vpack.c.bf16 %v1017_v12, %v1016_v17  ;;  %v599_v59 = vpop.permute.xlu1 %598  ;;  %v2626_v12 = vld [vmem:[#allocation19_spill] sm:$0xff] }
 0x1d1   :  { %v641_v57 = vmul.f32 %v2132_v15, %v599_v59  ;;  %v207_v23 = vmul.f32 %v2035_v16, %v2626_v12 }
 0x1d2   :  { %1385 = vmatpush1.bf16.msra.mxu0 %v1384_v31  ;;  %1416 = vmatpush1.bf16.msra.mxu1 %v1384_v31  ;;  %v2627_v31 = vld [vmem:[#allocation45_spill] sm:$0xff] }
 0x1d3   :  { %1386 = vmatprep.subr.bf16.mxu0 %v2586_v35  ;;  %1404 = vmatprep.subr.bf16.mxu1 %v2586_v35  ;;  %v666_v42 = vadd.f32 %v641_v57, %v2169_v27  ;;  %v208_v27 = vmul.f32 %v2035_v16, %v2180_v11  ;;  %v490_v59 = vmul.f32 %v2041_v5, %v2627_v31 }
 0x1d4   :  { %v603_v61 = vpop.permute.xlu1 %602  ;;  %v361_v41 = vadd.f32 %v336_v10, %v207_v23 }
 0x1d5   :  { %v642_v7 = vmul.f32 %v2132_v15, %v603_v61  ;;  %v615_v61 = vpop.permute.xlu0 %614  ;;  %v362_v11 = vadd.f32 %v337_v63, %v208_v27 }
 0x1d6   :  { %v515_v16 = vadd.f32 %v490_v59, %v361_v41  ;;  %v645_v2 = vmul.f32 %v2132_v15, %v615_v61 }
 0x1d7   :  { %v667_v33 = vadd.f32 %v642_v7, %v513_v55  ;;  %v1029_v7 = vld [vmem:[%s2517_s3 + $0x20] sm:$0xff]  ;;  %v1032_v55 = vld [vmem:[%s2517_s3 + $0x38] sm:$0xff] }
 0x1d8   :  { %v669_v52 = vadd.f32 %v644_v45, %v515_v16 }
 0x1d9   :  { %v753_v46 = vpop.permute.xlu1 %752 }
 0x1da   :  { %v795_v47 = vmul.f32 %v2151_v53, %v753_v46 }
 0x1dc   :  { %v820_v40 = vadd.f32 %v795_v47, %v666_v42  ;;  %v1027_v47 = vld [vmem:[%s2517_s3 + $0x10] sm:$0xff]  ;;  %v1040_v42 = vld [vmem:[%s2517_s3 + $0x78] sm:$0xff] }
 0x1dd   :  { %v757_v37 = vpop.permute.xlu1 %756 }
 0x1de   :  { %v796_v51 = vmul.f32 %v2151_v53, %v757_v37  ;;  %v995_v43 = vadd.f32 %v953_v22, %v820_v40  ;;  %v1039_v22 = vld [vmem:[%s2517_s3 + $0x70] sm:$0xff]  ;;  %v1042_v40 = vld [vmem:[%s2517_s3 + $0x88] sm:$0x3f] }
 0x1e0   :  { %v821_v24 = vadd.f32 %v796_v51, %v667_v33  ;;  %v1020_v4 = vmax.f32 %v995_v43, 0.0  ;;  %v1031_v51 = vld [vmem:[%s2517_s3 + $0x30] sm:$0xff]  ;;  %v1034_v33 = vld [vmem:[%s2517_s3 + $0x48] sm:$0xff]  ;;  %v1033_v43 = vld [vmem:[%s2517_s3 + $0x40] sm:$0xff] }
 0x1e2   :  { %v948_v29 = vpop.permute.xlu1 %947 }
 0x1e3   :  { %v994_v26 = vadd.f32 %v948_v29, %v819_v49 }
 0x1e5   :  { %v1019_v18 = vmax.f32 %v994_v26, 0.0 }
 0x1e7   :  { %v1387_v20 = vpack.c.bf16 %v1019_v18, %v1018_v0  ;;  %v607_v48 = vpop.permute.xlu1 %606 }
 0x1e8   :  { %v643_v50 = vmul.f32 %v2132_v15, %v607_v48  ;;  %v1507_v15 = vmov 0.0  }
 0x1e9   :  { %1388 = vmatpush1.bf16.msra.mxu0 %v1387_v20  ;;  %1417 = vmatpush1.bf16.msra.mxu1 %v1387_v20 }
 0x1ea   :  { %1389 = vmatprep.subr.bf16.mxu0 %v2586_v35  ;;  %1405 = vmatprep.subr.bf16.mxu1 %v2586_v35  ;;  %v668_v8 = vadd.f32 %v643_v50, %v2184_v44 }
 0x1ec   :  { %v761_v30 = vpop.permute.xlu1 %760 }
 0x1ed   :  { %v797_v21 = vmul.f32 %v2151_v53, %v761_v30  ;;  %v1037_v30 = vld [vmem:[%s2517_s3 + $0x60] sm:$0xff] }
 0x1ef   :  { %v822_v49 = vadd.f32 %v797_v21, %v668_v8 }
 0x1f0   :  { %v765_v38 = vpop.permute.xlu1 %764 }
 0x1f1   :  { %v798_v19 = vmul.f32 %v2151_v53, %v765_v38  ;;  %v1041_v38 = vld [vmem:[%s2517_s3 + $0x80] sm:$0x3f] }
 0x1f3   :  { %v823_v26 = vadd.f32 %v798_v19, %v669_v52 }
 0x1f5   :  { %v958_v56 = vpop.permute.xlu1 %957 }
 0x1f6   :  { %v996_v58 = vadd.f32 %v958_v56, %v821_v24 }
 0x1f8   :  { %v1021_v17 = vmax.f32 %v996_v58, 0.0 }
 0x1fa   :  { %v1390_v3 = vpack.c.bf16 %v1021_v17, %v1020_v4  ;;  %v461_v9 = vpop.permute.xlu1 %460 }
 0x1fb   :  { %v491_v46 = vmul.f32 %v2041_v5, %v461_v9  ;;  %v769_v5 = vpop.permute.xlu0 %768 }
 0x1fc   :  { %1391 = vmatpush1.bf16.msra.mxu0 %v1390_v3  ;;  %1418 = vmatpush1.bf16.msra.mxu1 %v1390_v3  ;;  %v799_v14 = vmul.f32 %v2151_v53, %v769_v5  ;;  %v1025_v53 = vld [vmem:[%s2517_s3] sm:$0xff]  ;;  %s1508_s3 = smov [#allocation3]  }
 0x1fd   :  { %1392 = vmatprep.subr.bf16.mxu0 %v2586_v35  ;;  %1406 = vmatprep.subr.bf16.mxu1 %v2586_v35  ;;  %v516_v37 = vadd.f32 %v491_v46, %v362_v11  ;;  %s1342_s16 = sshll.u32 %s1508_s3, 4  ;;  %s1343_s16 = int_to_ptr.vmem [resolvable:$true] %s1342_s16 }
 0x1fe   :  { %s1477_s17 = scalar_lea.vmem %s1343_s16, 16  ;;  %s1481_s18 = scalar_lea.vmem %s1343_s16, 32 }
 0x1ff   :  { %v963_v36 = vpop.permute.xlu1 %962  ;;  %v670_v0 = vadd.f32 %v645_v2, %v516_v37  ;;  %p1478_p0 = scmp.ne.s32.totalorder %s1343_s16, %s1477_s17  ;;  %p1482_p1 = scmp.lt.s32.totalorder %s1343_s16, %s1343_s16 }
 0x200   :  { %v997_v29 = vadd.f32 %v963_v36, %v822_v49  ;;  %p1483_p2 = scmp.lt.s32.totalorder %s1481_s18, %s1477_s17 }
 0x201   :  { %v824_v25 = vadd.f32 %v799_v14, %v670_v0 }
 0x202   :  { %v1022_v48 = vmax.f32 %v997_v29, 0.0  ;;  %p1484_p3 = por %p1483_p2, %p1482_p1 }
 0x203   :  { %v968_v18 = vpop.permute.xlu1 %967 }
 0x204   :  { %v998_v20 = vadd.f32 %v968_v18, %v823_v26  ;;  %p1485_p4 = pnand %p1484_p3, %p1478_p0 }
 0x206   :  { %v1023_v35 = vmax.f32 %v998_v20, 0.0 }
 0x207   :  { %v973_v44 = vpop.permute.xlu1 %972 }
 0x208   :  { %v1393_v34 = vpack.c.bf16 %v1023_v35, %v1022_v48  ;;  %v999_v57 = vadd.f32 %v973_v44, %v824_v25 }
 0x20a   :  { %1394 = vmatpush1.bf16.msra.mxu0 %v1393_v34  ;;  %1419 = vmatpush1.bf16.msra.mxu1 %v1393_v34  ;;  %v1024_v54 = vmax.f32 %v999_v57, 0.0 }
 0x20b   :  { %1173 = vmatprep.subr.mxu0 %v1507_v15  ;;  %1407 = vmatprep.subr.mxu1 %v1507_v15  ;;  %v1055_v24 = vpop.permute.xlu1 %1054 }
 0x20e   :  { %1174 = vmatpush1.msra.mxu0 %v1024_v54  ;;  %1420 = vmatpush1.msra.mxu1 %v1024_v54 }
 0x20f   :  { %1190 = vmatmul.mubr.f32.vlgmr.msra.gmra.mrb[0].mxu0 %v1025_v53  ;;  %1215 = vmatmul.mubr.f32.vlgmr.msra.gmra.mrb[0].mxu1 %v1035_v62  ;;  %v1065_v1 = vpop.permute.xlu1 %1064 }
 0x210   :  { %1351 = vmatprep.mubr.msk.f32.mxu0 %vm1097_vm0, %v1028_v60  ;;  %1356 = vmatprep.mubr.msk.f32.mxu1 %vm1097_vm0, %v1038_v6 }
 0x213   :  { %1195 = vmatmul.mubr.f32.gmra.mrb[2].mxu0 %v1027_v47  ;;  %1220 = vmatmul.mubr.f32.gmra.mrb[2].mxu1 %v1037_v30  ;;  %v1070_v56 = vpop.permute.xlu1 %1069 }
 0x214   :  { %1352 = vmatprep.mubr.msk.f32.mxu0 %vm1097_vm0, %v1030_v13  ;;  %1357 = vmatprep.mubr.msk.f32.mxu1 %vm1097_vm0, %v1040_v42 }
 0x215   :  { %v1060_v58 = vpop.permute.xlu0 %1059 }
 0x217   :  { %1200 = vmatmul.mubr.f32.gmra.mrb[4].mxu0 %v1029_v7  ;;  %1225 = vmatmul.mubr.f32.gmra.mrb[4].mxu1 %v1039_v22  ;;  %v1261_v28 = vpop.permute.xlu1 %1260 }
 0x218   :  { %1353 = vmatprep.mubr.msk.f32.mxu0 %vm1097_vm0, %v1032_v55  ;;  %1358 = vmatprep.mubr.msk.f32.mxu1 %vm1097_vm0, %v1042_v40 }
 0x21a   :  { %v1256_v10 = vpop.permute.xlu0 %1255 }
 0x21b   :  { %1205 = vmatmul.mubr.f32.gmra.mrb[6].mxu0 %v1031_v51  ;;  %1230 = vmatmul.mubr.f32.gmra.mrb[6].mxu1 %v1041_v38  ;;  %v1266_v27 = vpop.permute.xlu1 %1265 }
 0x21c   :  { %1354 = vmatprep.mubr.msk.f32.mxu0 %vm1097_vm0, %v1034_v33 }
 0x21e   :  { %v1075_v4 = vpop.permute.xlu0 %1074 }
 0x21f   :  { %1210 = vmatmul.mubr.f32.gmra.mrb[8].mxu0 %v1033_v43  ;;  %v1271_v17 = vpop.permute.xlu1 %1270 }
 0x222   :  { %v1080_v12 = vpop.permute.xlu0 %1079 }
 0x223   :  { %v1276_v63 = vpop.permute.xlu1 %1275 }
 0x226   :  { %v1085_v50 = vpop.permute.xlu0 %1084 }
 0x227   :  { %v1281_v52 = vpop.permute.xlu1 %1280 }
 0x22a   :  { %v1090_v49 = vpop.permute.xlu0 %1089 }
 0x22b   :  { %v1286_v47 = vpop.permute.xlu1 %1285 }
 0x22e   :  { %v1095_v15 = vpop.permute.xlu0 %1094 }
 0x22f   :  { %v1296_v43 = vpop.permute.xlu1 %1295 }
 0x2e2   :  { %v1191_v23 = vpop.f32.mrb[0].mxu0  ;;  %v1216_v31 = vpop.f32.mrb[0].mxu1 }
 0x2e3   :  { %v1192_v59 = vadd.f32 %v1191_v23, %v1055_v24  ;;  %v1193_v61 = vpop.f32.mrb[1].mxu0  ;;  %v1218_v32 = vpop.f32.mrb[1].mxu1  ;;  %v1217_v25 = vadd.f32 %v1216_v31, %v1080_v12 }
 0x2e5   :  { %v1235_v41 = vmax.f32 %v1192_v59, 0.0  ;;  %v1240_v30 = vmax.f32 %v1217_v25, 0.0 }
 0x2e6   :  { %v1196_v3 = vpop.f32.mrb[2].mxu0  ;;  %v1221_v9 = vpop.f32.mrb[2].mxu1 }
 0x2e7   :  { %v1197_v46 = vadd.f32 %v1196_v3, %v1060_v58  ;;  %v1198_v11 = vpop.f32.mrb[3].mxu0  ;;  %v1223_v45 = vpop.f32.mrb[3].mxu1  ;;  %v1298_v19 = vmul.f32 %v1256_v10, %v1235_v41  ;;  %v1222_v54 = vadd.f32 %v1221_v9, %v1085_v50  ;;  %v1303_v51 = vmul.f32 %v1281_v52, %v1240_v30 }
 0x2e9   :  { %v1236_v21 = vmax.f32 %v1197_v46, 0.0  ;;  %v1241_v22 = vmax.f32 %v1222_v54, 0.0 }
 0x2ea   :  { %v1201_v16 = vpop.f32.mrb[4].mxu0  ;;  %v1226_v8 = vpop.f32.mrb[4].mxu1 }
 0x2eb   :  { %v1299_v2 = vmul.f32 %v1261_v28, %v1236_v21  ;;  %v1202_v37 = vadd.f32 %v1201_v16, %v1065_v1  ;;  %v1203_v5 = vpop.f32.mrb[5].mxu0  ;;  %v1228_v36 = vpop.f32.mrb[5].mxu1  ;;  %v1227_v13 = vadd.f32 %v1226_v8, %v1090_v49  ;;  %v1304_v24 = vmul.f32 %v1286_v47, %v1241_v22 }
 0x2ed   :  { %v1307_v14 = vadd.f32 %v1299_v2, %v1298_v19  ;;  %v1237_v29 = vmax.f32 %v1202_v37, 0.0  ;;  %v1242_v38 = vmax.f32 %v1227_v13, 0.0 }
 0x2ee   :  { %v1206_v26 = vpop.f32.mrb[6].mxu0  ;;  %v1231_v0 = vpop.f32.mrb[6].mxu1 }
 0x2ef   :  { %v1300_v18 = vmul.f32 %v1266_v27, %v1237_v29  ;;  %v1207_v20 = vadd.f32 %v1206_v26, %v1070_v56  ;;  %v1208_v48 = vpop.f32.mrb[7].mxu0  ;;  %v1233_v35 = vpop.f32.mrb[7].mxu1  ;;  %v1232_v6 = vadd.f32 %v1231_v0, %v1095_v15 }
 0x2f0   :  { %v1291_v56 = vpop.permute.xlu0 %1290 }
 0x2f1   :  { %v1308_v44 = vadd.f32 %v1307_v14, %v1300_v18  ;;  %v1238_v34 = vmax.f32 %v1207_v20, 0.0  ;;  %v1243_v40 = vmax.f32 %v1232_v6, 0.0  ;;  %v1305_v28 = vmul.f32 %v1291_v56, %v1242_v38 }
 0x2f2   :  { %v1211_v57 = vpop.f32.mrb[8].mxu0 }
 0x2f3   :  { %v1301_v53 = vmul.f32 %v1271_v17, %v1238_v34  ;;  %v1212_v62 = vadd.f32 %v1211_v57, %v1075_v4  ;;  %v1213_v60 = vpop.f32.mrb[9].mxu0  ;;  %v1306_v58 = vmul.f32 %v1296_v43, %v1243_v40 }
 0x2f4   :  { %v1327_v61 = vpop.permute.xlu0 %1326 }
 0x2f5   :  { %v1309_v42 = vadd.f32 %v1308_v44, %v1301_v53  ;;  %v1239_v7 = vmax.f32 %v1212_v62, 0.0  ;;  %v1315_v4 = vsel %vm1314_vm1, %v1306_v58, 0.0 }
 0x2f7   :  { %v1302_v55 = vmul.f32 %v1276_v63, %v1239_v7  ;;  %v2629_v63 = vsub.s32 0, %v2013_v39 }
 0x2f9   :  { %v1310_v33 = vadd.f32 %v1309_v42, %v1302_v55  ;;  %v1332_v50 = vrot.slane %v1327_v61, %v2629_v63 }
 0x2fb   :  { %v1311_v1 = vadd.f32 %v1310_v33, %v1303_v51 }
 0x2fd   :  { %v1312_v10 = vadd.f32 %v1311_v1, %v1304_v24 }
 0x2ff   :  { %v1313_v27 = vadd.f32 %v1312_v10, %v1305_v28 }
 0x301   :  { %v1316_v17 = vadd.f32 %v1315_v4, %v1313_v27 }
 0x303   :  { %v1317_v12 = vrot.slane %v1316_v17, 4 }
 0x305   :  { %v1318_v23 = vadd.f32 %v1317_v12, %v1316_v17 }
 0x307   :  { %v1319_v31 = vrot.slane %v1318_v23, 2 }
 0x309   :  { %v1320_v59 = vadd.f32 %v1319_v31, %v1318_v23 }
 0x30b   :  { %v1321_v32 = vrot.slane %v1320_v59, 1 }
 0x30d   :  { %v1322_v3 = vadd.f32 %v1321_v32, %v1320_v59 }
 0x30f   :  { %v1333_v9 = vadd.f32 %v1332_v50, %v1322_v3 }
 0x311   :  { %v1334_v41 = vmax.f32 %v1333_v9, 0.0 }
 0x313   :  { %1335 = vst [vmem:[#allocation3] sm:$0x1] %v1334_v41 }
 0x314   :  { %1488 = shalt.err (!%p1485_p4)
}
 0x315   :  { %s1489_s21 = scalar_lea.hbm %s2521_s7, 16 }
 0x316   :  { %p1490_p5 = scmp.ne.s32.totalorder %s2521_s7, %s1489_s21  ;;  %p1493_p6 = scmp.lt.u32.totalorder %s1489_s21, %s2521_s7 }
 0x318   :  { %p1495_p7 = pnand %p1493_p6, %p1490_p5 }
 0x31a   :  { %1498 = shalt.err (!%p1495_p7)
}
 0x31b   :  { %1345 = dma.vmem_to_hbm [thread:$0]  %s1343_s16, 16, %s2521_s7, [#allocation4]  }
 0x31c   :  { %1499 = dma.done.wait [#allocation4], 16  }
 0x31d   :  { %1500 = vsyncadd [#allocation4], 4294967280 }
 0x31e   :  { %1349 = vsyncpa [#allocation4], 1 }

</bundles_post_ra>
